<compile_context>
chip_gen: v7x
topology: tpu7x:2x2x1
jax: 0.10.0
libtpu: 0.0.40
codegen_flags: <defaults>
</compile_context>

<pallas_src>
import jax
import jax.numpy as jnp
from jax.experimental import pallas as pl
from jax.experimental.pallas import tpu as pltpu


def _l1_dist_kernel(a_ref, bt_ref, o_ref):
    # a_ref:  (tm, D)   row tile of labels (the "i" side)
    # bt_ref: (D,  tn)  column tile of labels, pre-transposed (the "j" side)
    # o_ref:  (tm, tn)  output tile
    tm, D = a_ref.shape
    tn = bt_ref.shape[1]

    acc = jnp.zeros((tm, tn), jnp.float32)
    # D is small (label dim); a static Python loop fully unrolls.  Each step is
    # a lane-dense (tm, tn) VPU abs/sub/add — no 3D temp, no spills, no XLU.
    for d in range(D):
        a_col = a_ref[:, d:d + 1].astype(jnp.float32)   # (tm, 1) broadcast over lanes
        b_row = bt_ref[d:d + 1, :].astype(jnp.float32)  # (1, tn) broadcast over sublanes
        acc = acc + jnp.abs(a_col - b_row)

    o_ref[...] = acc.astype(o_ref.dtype)


def label_difference_l1(labels: jax.Array, *, tm: int | None = None,
                        tn: int | None = None) -> jax.Array:
    """Pairwise L1 distance over label vectors. labels: (N, D) -> (N, N)."""
    N, D = labels.shape

    # Default tiles: big enough to amortize per-step overhead, capped at N.
    if tm is None:
        tm = min(256, N)
    if tn is None:
        tn = min(512, N)

    assert N % tm == 0, "N must be divisible by the row tile size tm"
    assert N % tn == 0, "N must be divisible by the column tile size tn"
    assert tm % 8 == 0, "tm must be a multiple of 8 (sublane tiling)"
    assert tn % 128 == 0 or tn == N, "tn must be a multiple of 128 (lane tiling)"

    # Transpose the j-side operand once, outside the kernel, so N lands on the
    # lane axis inside VMEM.
    labels_t = labels.T  # (D, N)

    return pl.pallas_call(
        _l1_dist_kernel,
        out_shape=jax.ShapeDtypeStruct((N, N), labels.dtype),
        grid_spec=pltpu.PrefetchScalarGridSpec(
            num_scalar_prefetch=0,
            grid=(N // tm, N // tn),
            in_specs=[
                # (tm, D) row tile of labels — "i" axis tiled.
                pl.BlockSpec((tm, D), lambda i, j: (i, 0)),
                # (D, tn) column tile of transposed labels — "j" axis tiled.
                pl.BlockSpec((D, tn), lambda i, j: (0, j)),
            ],
            out_specs=pl.BlockSpec((tm, tn), lambda i, j: (i, j)),
        ),
        compiler_params=pltpu.CompilerParams(
            dimension_semantics=("parallel", "parallel"),
        ),
    )(labels, labels_t)


def _reference(labels: jax.Array) -> jax.Array:
    # Pure-JAX reference mirroring the PyTorch forward exactly.
    return jnp.abs(labels[:, None, :] - labels[None, :, :]).sum(axis=-1)


if __name__ == "__main__":
    key = jax.random.PRNGKey(0)
    N, D = 128, 16                       # small, tile-friendly test shape
    labels = jax.random.normal(key, (N, D), dtype=jnp.float32)

    out = label_difference_l1(labels)
    out = jax.block_until_ready(out)

    ref = _reference(labels)
    assert out.shape == (N, N)
    assert out.dtype == labels.dtype
    assert jnp.allclose(out, ref, atol=1e-5, rtol=1e-5)

    print("KERNEL_OK")
</pallas_src>

<mosaic_0001>
module attributes {stable_mosaic.version = 11 : i64} {
  func.func @_l1_dist_kernel(%arg0: i32, %arg1: i32, %arg2: memref<128x16xf32, #tpu.memory_space<vmem>>, %arg3: memref<16x128xf32, #tpu.memory_space<vmem>>, %arg4: memref<128x128xf32, #tpu.memory_space<vmem>>) attributes {dimension_semantics = [#tpu.dimension_semantics<parallel>, #tpu.dimension_semantics<parallel>], iteration_bounds = array<i64: 1, 1>, scalar_prefetch = 0 : i64, scratch_operands = 0 : i64, tpu.core_type = #tpu.core_type<tc>, window_params = [{transform_indices = @transform_0, window_bounds = array<i64: 128, 16>}, {transform_indices = @transform_1, window_bounds = array<i64: 16, 128>}, {transform_indices = @transform_2, window_bounds = array<i64: 128, 128>}]} {
    %cst = arith.constant 0.000000e+00 : f32
    %0 = vector.broadcast %cst : f32 to vector<128x128xf32>
    %c0 = arith.constant 0 : index
    %c0_0 = arith.constant 0 : index
    %1 = vector.load %arg2[%c0, %c0_0] : memref<128x16xf32, #tpu.memory_space<vmem>>, vector<128x1xf32>
    %c0_1 = arith.constant 0 : index
    %c0_2 = arith.constant 0 : index
    %2 = vector.load %arg3[%c0_1, %c0_2] : memref<16x128xf32, #tpu.memory_space<vmem>>, vector<1x128xf32>
    %3 = vector.broadcast %1 : vector<128x1xf32> to vector<128x128xf32>
    %4 = vector.broadcast %2 : vector<1x128xf32> to vector<128x128xf32>
    %5 = arith.subf %3, %4 : vector<128x128xf32>
    %6 = math.absf %5 : vector<128x128xf32>
    %7 = arith.addf %0, %6 : vector<128x128xf32>
    %c0_3 = arith.constant 0 : index
    %c1 = arith.constant 1 : index
    %8 = vector.load %arg2[%c0_3, %c1] : memref<128x16xf32, #tpu.memory_space<vmem>>, vector<128x1xf32>
    %c1_4 = arith.constant 1 : index
    %c0_5 = arith.constant 0 : index
    %9 = vector.load %arg3[%c1_4, %c0_5] : memref<16x128xf32, #tpu.memory_space<vmem>>, vector<1x128xf32>
    %10 = vector.broadcast %8 : vector<128x1xf32> to vector<128x128xf32>
    %11 = vector.broadcast %9 : vector<1x128xf32> to vector<128x128xf32>
    %12 = arith.subf %10, %11 : vector<128x128xf32>
    %13 = math.absf %12 : vector<128x128xf32>
    %14 = arith.addf %7, %13 : vector<128x128xf32>
    %c0_6 = arith.constant 0 : index
    %c2 = arith.constant 2 : index
    %15 = vector.load %arg2[%c0_6, %c2] : memref<128x16xf32, #tpu.memory_space<vmem>>, vector<128x1xf32>
    %c2_7 = arith.constant 2 : index
    %c0_8 = arith.constant 0 : index
    %16 = vector.load %arg3[%c2_7, %c0_8] : memref<16x128xf32, #tpu.memory_space<vmem>>, vector<1x128xf32>
    %17 = vector.broadcast %15 : vector<128x1xf32> to vector<128x128xf32>
    %18 = vector.broadcast %16 : vector<1x128xf32> to vector<128x128xf32>
    %19 = arith.subf %17, %18 : vector<128x128xf32>
    %20 = math.absf %19 : vector<128x128xf32>
    %21 = arith.addf %14, %20 : vector<128x128xf32>
    %c0_9 = arith.constant 0 : index
    %c3 = arith.constant 3 : index
    %22 = vector.load %arg2[%c0_9, %c3] : memref<128x16xf32, #tpu.memory_space<vmem>>, vector<128x1xf32>
    %c3_10 = arith.constant 3 : index
    %c0_11 = arith.constant 0 : index
    %23 = vector.load %arg3[%c3_10, %c0_11] : memref<16x128xf32, #tpu.memory_space<vmem>>, vector<1x128xf32>
    %24 = vector.broadcast %22 : vector<128x1xf32> to vector<128x128xf32>
    %25 = vector.broadcast %23 : vector<1x128xf32> to vector<128x128xf32>
    %26 = arith.subf %24, %25 : vector<128x128xf32>
    %27 = math.absf %26 : vector<128x128xf32>
    %28 = arith.addf %21, %27 : vector<128x128xf32>
    %c0_12 = arith.constant 0 : index
    %c4 = arith.constant 4 : index
    %29 = vector.load %arg2[%c0_12, %c4] : memref<128x16xf32, #tpu.memory_space<vmem>>, vector<128x1xf32>
    %c4_13 = arith.constant 4 : index
    %c0_14 = arith.constant 0 : index
    %30 = vector.load %arg3[%c4_13, %c0_14] : memref<16x128xf32, #tpu.memory_space<vmem>>, vector<1x128xf32>
    %31 = vector.broadcast %29 : vector<128x1xf32> to vector<128x128xf32>
    %32 = vector.broadcast %30 : vector<1x128xf32> to vector<128x128xf32>
    %33 = arith.subf %31, %32 : vector<128x128xf32>
    %34 = math.absf %33 : vector<128x128xf32>
    %35 = arith.addf %28, %34 : vector<128x128xf32>
    %c0_15 = arith.constant 0 : index
    %c5 = arith.constant 5 : index
    %36 = vector.load %arg2[%c0_15, %c5] : memref<128x16xf32, #tpu.memory_space<vmem>>, vector<128x1xf32>
    %c5_16 = arith.constant 5 : index
    %c0_17 = arith.constant 0 : index
    %37 = vector.load %arg3[%c5_16, %c0_17] : memref<16x128xf32, #tpu.memory_space<vmem>>, vector<1x128xf32>
    %38 = vector.broadcast %36 : vector<128x1xf32> to vector<128x128xf32>
    %39 = vector.broadcast %37 : vector<1x128xf32> to vector<128x128xf32>
    %40 = arith.subf %38, %39 : vector<128x128xf32>
    %41 = math.absf %40 : vector<128x128xf32>
    %42 = arith.addf %35, %41 : vector<128x128xf32>
    %c0_18 = arith.constant 0 : index
    %c6 = arith.constant 6 : index
    %43 = vector.load %arg2[%c0_18, %c6] : memref<128x16xf32, #tpu.memory_space<vmem>>, vector<128x1xf32>
    %c6_19 = arith.constant 6 : index
    %c0_20 = arith.constant 0 : index
    %44 = vector.load %arg3[%c6_19, %c0_20] : memref<16x128xf32, #tpu.memory_space<vmem>>, vector<1x128xf32>
    %45 = vector.broadcast %43 : vector<128x1xf32> to vector<128x128xf32>
    %46 = vector.broadcast %44 : vector<1x128xf32> to vector<128x128xf32>
    %47 = arith.subf %45, %46 : vector<128x128xf32>
    %48 = math.absf %47 : vector<128x128xf32>
    %49 = arith.addf %42, %48 : vector<128x128xf32>
    %c0_21 = arith.constant 0 : index
    %c7 = arith.constant 7 : index
    %50 = vector.load %arg2[%c0_21, %c7] : memref<128x16xf32, #tpu.memory_space<vmem>>, vector<128x1xf32>
    %c7_22 = arith.constant 7 : index
    %c0_23 = arith.constant 0 : index
    %51 = vector.load %arg3[%c7_22, %c0_23] : memref<16x128xf32, #tpu.memory_space<vmem>>, vector<1x128xf32>
    %52 = vector.broadcast %50 : vector<128x1xf32> to vector<128x128xf32>
    %53 = vector.broadcast %51 : vector<1x128xf32> to vector<128x128xf32>
    %54 = arith.subf %52, %53 : vector<128x128xf32>
    %55 = math.absf %54 : vector<128x128xf32>
    %56 = arith.addf %49, %55 : vector<128x128xf32>
    %c0_24 = arith.constant 0 : index
    %c8 = arith.constant 8 : index
    %57 = vector.load %arg2[%c0_24, %c8] : memref<128x16xf32, #tpu.memory_space<vmem>>, vector<128x1xf32>
    %c8_25 = arith.constant 8 : index
    %c0_26 = arith.constant 0 : index
    %58 = vector.load %arg3[%c8_25, %c0_26] : memref<16x128xf32, #tpu.memory_space<vmem>>, vector<1x128xf32>
    %59 = vector.broadcast %57 : vector<128x1xf32> to vector<128x128xf32>
    %60 = vector.broadcast %58 : vector<1x128xf32> to vector<128x128xf32>
    %61 = arith.subf %59, %60 : vector<128x128xf32>
    %62 = math.absf %61 : vector<128x128xf32>
    %63 = arith.addf %56, %62 : vector<128x128xf32>
    %c0_27 = arith.constant 0 : index
    %c9 = arith.constant 9 : index
    %64 = vector.load %arg2[%c0_27, %c9] : memref<128x16xf32, #tpu.memory_space<vmem>>, vector<128x1xf32>
    %c9_28 = arith.constant 9 : index
    %c0_29 = arith.constant 0 : index
    %65 = vector.load %arg3[%c9_28, %c0_29] : memref<16x128xf32, #tpu.memory_space<vmem>>, vector<1x128xf32>
    %66 = vector.broadcast %64 : vector<128x1xf32> to vector<128x128xf32>
    %67 = vector.broadcast %65 : vector<1x128xf32> to vector<128x128xf32>
    %68 = arith.subf %66, %67 : vector<128x128xf32>
    %69 = math.absf %68 : vector<128x128xf32>
    %70 = arith.addf %63, %69 : vector<128x128xf32>
    %c0_30 = arith.constant 0 : index
    %c10 = arith.constant 10 : index
    %71 = vector.load %arg2[%c0_30, %c10] : memref<128x16xf32, #tpu.memory_space<vmem>>, vector<128x1xf32>
    %c10_31 = arith.constant 10 : index
    %c0_32 = arith.constant 0 : index
    %72 = vector.load %arg3[%c10_31, %c0_32] : memref<16x128xf32, #tpu.memory_space<vmem>>, vector<1x128xf32>
    %73 = vector.broadcast %71 : vector<128x1xf32> to vector<128x128xf32>
    %74 = vector.broadcast %72 : vector<1x128xf32> to vector<128x128xf32>
    %75 = arith.subf %73, %74 : vector<128x128xf32>
    %76 = math.absf %75 : vector<128x128xf32>
    %77 = arith.addf %70, %76 : vector<128x128xf32>
    %c0_33 = arith.constant 0 : index
    %c11 = arith.constant 11 : index
    %78 = vector.load %arg2[%c0_33, %c11] : memref<128x16xf32, #tpu.memory_space<vmem>>, vector<128x1xf32>
    %c11_34 = arith.constant 11 : index
    %c0_35 = arith.constant 0 : index
    %79 = vector.load %arg3[%c11_34, %c0_35] : memref<16x128xf32, #tpu.memory_space<vmem>>, vector<1x128xf32>
    %80 = vector.broadcast %78 : vector<128x1xf32> to vector<128x128xf32>
    %81 = vector.broadcast %79 : vector<1x128xf32> to vector<128x128xf32>
    %82 = arith.subf %80, %81 : vector<128x128xf32>
    %83 = math.absf %82 : vector<128x128xf32>
    %84 = arith.addf %77, %83 : vector<128x128xf32>
    %c0_36 = arith.constant 0 : index
    %c12 = arith.constant 12 : index
    %85 = vector.load %arg2[%c0_36, %c12] : memref<128x16xf32, #tpu.memory_space<vmem>>, vector<128x1xf32>
    %c12_37 = arith.constant 12 : index
    %c0_38 = arith.constant 0 : index
    %86 = vector.load %arg3[%c12_37, %c0_38] : memref<16x128xf32, #tpu.memory_space<vmem>>, vector<1x128xf32>
    %87 = vector.broadcast %85 : vector<128x1xf32> to vector<128x128xf32>
    %88 = vector.broadcast %86 : vector<1x128xf32> to vector<128x128xf32>
    %89 = arith.subf %87, %88 : vector<128x128xf32>
    %90 = math.absf %89 : vector<128x128xf32>
    %91 = arith.addf %84, %90 : vector<128x128xf32>
    %c0_39 = arith.constant 0 : index
    %c13 = arith.constant 13 : index
    %92 = vector.load %arg2[%c0_39, %c13] : memref<128x16xf32, #tpu.memory_space<vmem>>, vector<128x1xf32>
    %c13_40 = arith.constant 13 : index
    %c0_41 = arith.constant 0 : index
    %93 = vector.load %arg3[%c13_40, %c0_41] : memref<16x128xf32, #tpu.memory_space<vmem>>, vector<1x128xf32>
    %94 = vector.broadcast %92 : vector<128x1xf32> to vector<128x128xf32>
    %95 = vector.broadcast %93 : vector<1x128xf32> to vector<128x128xf32>
    %96 = arith.subf %94, %95 : vector<128x128xf32>
    %97 = math.absf %96 : vector<128x128xf32>
    %98 = arith.addf %91, %97 : vector<128x128xf32>
    %c0_42 = arith.constant 0 : index
    %c14 = arith.constant 14 : index
    %99 = vector.load %arg2[%c0_42, %c14] : memref<128x16xf32, #tpu.memory_space<vmem>>, vector<128x1xf32>
    %c14_43 = arith.constant 14 : index
    %c0_44 = arith.constant 0 : index
    %100 = vector.load %arg3[%c14_43, %c0_44] : memref<16x128xf32, #tpu.memory_space<vmem>>, vector<1x128xf32>
    %101 = vector.broadcast %99 : vector<128x1xf32> to vector<128x128xf32>
    %102 = vector.broadcast %100 : vector<1x128xf32> to vector<128x128xf32>
    %103 = arith.subf %101, %102 : vector<128x128xf32>
    %104 = math.absf %103 : vector<128x128xf32>
    %105 = arith.addf %98, %104 : vector<128x128xf32>
    %c0_45 = arith.constant 0 : index
    %c15 = arith.constant 15 : index
    %106 = vector.load %arg2[%c0_45, %c15] : memref<128x16xf32, #tpu.memory_space<vmem>>, vector<128x1xf32>
    %c15_46 = arith.constant 15 : index
    %c0_47 = arith.constant 0 : index
    %107 = vector.load %arg3[%c15_46, %c0_47] : memref<16x128xf32, #tpu.memory_space<vmem>>, vector<1x128xf32>
    %108 = vector.broadcast %106 : vector<128x1xf32> to vector<128x128xf32>
    %109 = vector.broadcast %107 : vector<1x128xf32> to vector<128x128xf32>
    %110 = arith.subf %108, %109 : vector<128x128xf32>
    %111 = math.absf %110 : vector<128x128xf32>
    %112 = arith.addf %105, %111 : vector<128x128xf32>
    %c0_48 = arith.constant 0 : index
    %c0_49 = arith.constant 0 : index
    %113 = vector.load %arg4[%c0_48, %c0_49] : memref<128x128xf32, #tpu.memory_space<vmem>>, vector<128x128xf32>
    tpu.vector_store %arg4[%c0_48, %c0_49], %112 {strides = array<i32>} : memref<128x128xf32, #tpu.memory_space<vmem>>, vector<128x128xf32>,
    return
  }
  func.func @transform_0(%arg0: i32, %arg1: i32) -> (i32, i32) {
    %c0_i32 = arith.constant 0 : i32
    %c0_i32_0 = arith.constant 0 : i32
    return %arg0, %c0_i32 : i32, i32
  }
  func.func @transform_1(%arg0: i32, %arg1: i32) -> (i32, i32) {
    %c0_i32 = arith.constant 0 : i32
    %c0_i32_0 = arith.constant 0 : i32
    return %c0_i32, %arg1 : i32, i32
  }
  func.func @transform_2(%arg0: i32, %arg1: i32) -> (i32, i32) {
    %c0_i32 = arith.constant 0 : i32
    return %arg0, %arg1 : i32, i32
  }
}

</mosaic_0001>

<bundles_post_ra>
// kernel: tpu_custom_call.1
= control target key start
LH: loop header
LB: loop body
LE: loop exit
PB: predicated region body
PF: predicated region fallthrough
CT: control target
= control target key end

     0   :  { %v2055_v2 = vmov 0   ;;  %s3677_s0 = inlined_call_operand.vmem [shape: f32[128,16], index: 0, kind: input, shape index: {}]   ;;  %s3678_s1 = inlined_call_operand.vmem [shape: f32[16,128], index: 1, kind: input, shape index: {}]   ;;  %s3679_s2 = inlined_call_operand.hbm [shape: f32[128,128], index: 2, kind: output, shape index: {}]  }
   0x1   :  { %v2092_v0 = vld [vmem:[%s3677_s0 + $0x10] sm:$0xff]  ;;  %v2097_v1 = vld [vmem:[%s3677_s0] sm:$0xff]  ;;  %1984 = vset.pattern.permute.xlu1 %v2055_v2  ;;  %1983 = vset.pattern.permute.xlu0 %v2055_v2  ;;  %v2104_v3 = vld [vmem:[%s3677_s0 + $0x18] sm:$0xff] }
   0x2   :  { %41 = vperm.xlu1 %1984, %v2092_v0   ;;  %31 = vperm.xlu0 %1983, %v2097_v1   ;;  %v2109_v4 = vld [vmem:[%s3677_s0 + $0x8] sm:$0xff] }
   0x3   :  { %7 = vsyncpa [#allocation3], 0  ;;  %v2116_v5 = vld [vmem:[%s3677_s0 + $0x28] sm:$0xff]  ;;  %v2121_v6 = vld [vmem:[%s3677_s0 + $0x20] sm:$0xff]  ;;  %v2056_v17 = vmov 1   ;;  %v2057_v18 = vmov 2  }
   0x4   :  { %v2128_v7 = vld [vmem:[%s3677_s0 + $0x38] sm:$0xff]  ;;  %v2133_v8 = vld [vmem:[%s3677_s0 + $0x30] sm:$0xff]  ;;  %v2140_v9 = vld [vmem:[%s3677_s0 + $0x48] sm:$0xff]  ;;  %v2058_v19 = vmov 3   ;;  %v2059_v21 = vmov 4   ;;  %v2060_v37 = vmov 5  }
   0x5   :  { %v2145_v10 = vld [vmem:[%s3677_s0 + $0x40] sm:$0xff]  ;;  %v2152_v11 = vld [vmem:[%s3677_s0 + $0x58] sm:$0xff]  ;;  %v2157_v12 = vld [vmem:[%s3677_s0 + $0x50] sm:$0xff]  ;;  %v2061_v54 = vmov 6  }
   0x6   :  { %46 = vperm.xlu1 %1984, %v2104_v3   ;;  %36 = vperm.xlu0 %1983, %v2109_v4   ;;  %v2164_v13 = vld [vmem:[%s3677_s0 + $0x68] sm:$0xff]  ;;  %v2169_v14 = vld [vmem:[%s3677_s0 + $0x60] sm:$0xff]  ;;  %v2176_v15 = vld [vmem:[%s3677_s0 + $0x78] sm:$0xff] }
   0x7   :  { %v2181_v16 = vld [vmem:[%s3677_s0 + $0x70] sm:$0xff] }
   0xa   :  { %56 = vperm.xlu1 %1984, %v2116_v5   ;;  %51 = vperm.xlu0 %1983, %v2121_v6  }
   0xe   :  { %66 = vperm.xlu1 %1984, %v2128_v7   ;;  %61 = vperm.xlu0 %1983, %v2133_v8  }
  0x12   :  { %76 = vperm.xlu1 %1984, %v2140_v9   ;;  %71 = vperm.xlu0 %1983, %v2145_v10  }
  0x16   :  { %86 = vperm.xlu1 %1984, %v2152_v11   ;;  %81 = vperm.xlu0 %1983, %v2157_v12  }
  0x1a   :  { %96 = vperm.xlu1 %1984, %v2164_v13   ;;  %91 = vperm.xlu0 %1983, %v2169_v14  }
  0x1e   :  { %106 = vperm.xlu1 %1984, %v2176_v15   ;;  %101 = vperm.xlu0 %1983, %v2181_v16  }
  0x22   :  { %1986 = vset.pattern.permute.xlu1 %v2056_v17  ;;  %1985 = vset.pattern.permute.xlu0 %v2056_v17 }
  0x23   :  { %167 = vperm.xlu1 %1986, %v2109_v4   ;;  %163 = vperm.xlu0 %1985, %v2097_v1  }
  0x27   :  { %171 = vperm.xlu1 %1986, %v2092_v0   ;;  %175 = vperm.xlu0 %1985, %v2104_v3  }
  0x2b   :  { %179 = vperm.xlu1 %1986, %v2121_v6   ;;  %183 = vperm.xlu0 %1985, %v2116_v5  }
  0x2f   :  { %187 = vperm.xlu1 %1986, %v2133_v8   ;;  %191 = vperm.xlu0 %1985, %v2128_v7  }
  0x33   :  { %195 = vperm.xlu1 %1986, %v2145_v10   ;;  %199 = vperm.xlu0 %1985, %v2140_v9  }
  0x37   :  { %203 = vperm.xlu1 %1986, %v2157_v12   ;;  %207 = vperm.xlu0 %1985, %v2152_v11  }
  0x3b   :  { %211 = vperm.xlu1 %1986, %v2169_v14   ;;  %215 = vperm.xlu0 %1985, %v2164_v13  }
  0x3f   :  { %219 = vperm.xlu1 %1986, %v2181_v16   ;;  %223 = vperm.xlu0 %1985, %v2176_v15  }
  0x43   :  { %1987 = vset.pattern.permute.xlu1 %v2057_v18  ;;  %1988 = vset.pattern.permute.xlu0 %v2057_v18 }
  0x44   :  { %280 = vperm.xlu1 %1987, %v2097_v1   ;;  %284 = vperm.xlu0 %1988, %v2109_v4  }
  0x48   :  { %288 = vperm.xlu1 %1987, %v2092_v0   ;;  %296 = vperm.xlu0 %1988, %v2121_v6  }
  0x4c   :  { %292 = vperm.xlu1 %1987, %v2104_v3   ;;  %304 = vperm.xlu0 %1988, %v2133_v8  }
  0x50   :  { %300 = vperm.xlu1 %1987, %v2116_v5   ;;  %312 = vperm.xlu0 %1988, %v2145_v10  }
  0x54   :  { %308 = vperm.xlu1 %1987, %v2128_v7   ;;  %320 = vperm.xlu0 %1988, %v2157_v12  }
  0x58   :  { %316 = vperm.xlu1 %1987, %v2140_v9   ;;  %328 = vperm.xlu0 %1988, %v2169_v14  }
  0x5c   :  { %324 = vperm.xlu1 %1987, %v2152_v11   ;;  %336 = vperm.xlu0 %1988, %v2181_v16  }
  0x60   :  { %332 = vperm.xlu1 %1987, %v2164_v13   ;;  %1989 = vset.pattern.permute.xlu0 %v2058_v19 }
  0x61   :  { %397 = vperm.xlu0 %1989, %v2097_v1  }
  0x64   :  { %340 = vperm.xlu1 %1987, %v2176_v15  }
  0x65   :  { %409 = vperm.xlu0 %1989, %v2104_v3  }
  0x68   :  { %1990 = vset.pattern.permute.xlu1 %v2058_v19 }
  0x69   :  { %401 = vperm.xlu1 %1990, %v2109_v4   ;;  %417 = vperm.xlu0 %1989, %v2116_v5  }
  0x6d   :  { %405 = vperm.xlu1 %1990, %v2092_v0   ;;  %425 = vperm.xlu0 %1989, %v2128_v7  }
  0x71   :  { %413 = vperm.xlu1 %1990, %v2121_v6   ;;  %433 = vperm.xlu0 %1989, %v2140_v9  }
  0x75   :  { %421 = vperm.xlu1 %1990, %v2133_v8   ;;  %441 = vperm.xlu0 %1989, %v2152_v11  }
  0x79   :  { %429 = vperm.xlu1 %1990, %v2145_v10   ;;  %449 = vperm.xlu0 %1989, %v2164_v13  }
  0x7d   :  { %437 = vperm.xlu1 %1990, %v2157_v12   ;;  %457 = vperm.xlu0 %1989, %v2176_v15  }
  0x81   :  { %v2231_v20 = vpop.permute.xlu1 %41  ;;  %445 = vperm.xlu1 %1990, %v2169_v14   ;;  %1992 = vset.pattern.permute.xlu0 %v2059_v21  ;;  %v2234_v22 = vpop.permute.xlu0 %31 }
  0x82   :  { %518 = vperm.xlu0 %1992, %v2109_v4  }
  0x85   :  { %v2237_v23 = vpop.permute.xlu1 %46  ;;  %453 = vperm.xlu1 %1990, %v2181_v16   ;;  %v2240_v24 = vpop.permute.xlu0 %36 }
  0x86   :  { %530 = vperm.xlu0 %1992, %v2121_v6  }
  0x89   :  { %v2243_v25 = vpop.permute.xlu1 %56  ;;  %1991 = vset.pattern.permute.xlu1 %v2059_v21  ;;  %v2245_v26 = vpop.permute.xlu0 %51 }
  0x8a   :  { %514 = vperm.xlu1 %1991, %v2097_v1   ;;  %538 = vperm.xlu0 %1992, %v2133_v8  }
  0x8d   :  { %v2249_v27 = vpop.permute.xlu1 %66  ;;  %v2251_v28 = vpop.permute.xlu0 %61 }
  0x8e   :  { %522 = vperm.xlu1 %1991, %v2092_v0   ;;  %546 = vperm.xlu0 %1992, %v2145_v10  }
  0x91   :  { %v2255_v29 = vpop.permute.xlu1 %76  ;;  %v2257_v30 = vpop.permute.xlu0 %71 }
  0x92   :  { %526 = vperm.xlu1 %1991, %v2104_v3   ;;  %554 = vperm.xlu0 %1992, %v2157_v12  }
  0x95   :  { %v2261_v31 = vpop.permute.xlu1 %86  ;;  %v2263_v32 = vpop.permute.xlu0 %81 }
  0x96   :  { %534 = vperm.xlu1 %1991, %v2116_v5   ;;  %562 = vperm.xlu0 %1992, %v2169_v14  }
  0x99   :  { %v2267_v33 = vpop.permute.xlu1 %96  ;;  %v2269_v34 = vpop.permute.xlu0 %91 }
  0x9a   :  { %542 = vperm.xlu1 %1991, %v2128_v7   ;;  %570 = vperm.xlu0 %1992, %v2181_v16  }
  0x9d   :  { %v2273_v35 = vpop.permute.xlu1 %106  ;;  %v2275_v36 = vpop.permute.xlu0 %101 }
  0x9e   :  { %550 = vperm.xlu1 %1991, %v2140_v9   ;;  %1993 = vset.pattern.permute.xlu0 %v2060_v37 }
  0x9f   :  { %631 = vperm.xlu0 %1993, %v2097_v1  }
  0xa2   :  { %v2279_v38 = vpop.permute.xlu1 %167  ;;  %558 = vperm.xlu1 %1991, %v2152_v11   ;;  %v2282_v39 = vpop.permute.xlu0 %163 }
  0xa3   :  { %643 = vperm.xlu0 %1993, %v2104_v3  }
  0xa6   :  { %v2285_v40 = vpop.permute.xlu1 %171  ;;  %566 = vperm.xlu1 %1991, %v2164_v13   ;;  %v2288_v41 = vpop.permute.xlu0 %175 }
  0xa7   :  { %651 = vperm.xlu0 %1993, %v2116_v5  }
  0xaa   :  { %v2291_v42 = vpop.permute.xlu1 %179  ;;  %574 = vperm.xlu1 %1991, %v2176_v15   ;;  %v2294_v43 = vpop.permute.xlu0 %183 }
  0xab   :  { %659 = vperm.xlu0 %1993, %v2128_v7  }
  0xae   :  { %v2297_v44 = vpop.permute.xlu1 %187  ;;  %1994 = vset.pattern.permute.xlu1 %v2060_v37  ;;  %v2299_v45 = vpop.permute.xlu0 %191  ;;  %v2062_v37 = vmov 7  }
  0xaf   :  { %635 = vperm.xlu1 %1994, %v2109_v4   ;;  %667 = vperm.xlu0 %1993, %v2140_v9  }
  0xb2   :  { %v2303_v46 = vpop.permute.xlu1 %195  ;;  %v2305_v47 = vpop.permute.xlu0 %199 }
  0xb3   :  { %639 = vperm.xlu1 %1994, %v2092_v0   ;;  %675 = vperm.xlu0 %1993, %v2152_v11  }
  0xb6   :  { %v2309_v48 = vpop.permute.xlu1 %203  ;;  %v2311_v49 = vpop.permute.xlu0 %207 }
  0xb7   :  { %647 = vperm.xlu1 %1994, %v2121_v6   ;;  %683 = vperm.xlu0 %1993, %v2164_v13  }
  0xba   :  { %v2315_v50 = vpop.permute.xlu1 %211  ;;  %v2317_v51 = vpop.permute.xlu0 %215 }
  0xbb   :  { %655 = vperm.xlu1 %1994, %v2133_v8   ;;  %691 = vperm.xlu0 %1993, %v2176_v15  }
  0xbe   :  { %v2321_v52 = vpop.permute.xlu1 %219  ;;  %v2323_v53 = vpop.permute.xlu0 %223 }
  0xbf   :  { %663 = vperm.xlu1 %1994, %v2145_v10   ;;  %1996 = vset.pattern.permute.xlu0 %v2061_v54 }
  0xc0   :  { %752 = vperm.xlu0 %1996, %v2109_v4  }
  0xc3   :  { %671 = vperm.xlu1 %1994, %v2157_v12   ;;  %v2328_v55 = vpop.permute.xlu1 %280  ;;  %v2330_v56 = vpop.permute.xlu0 %284 }
  0xc4   :  { %764 = vperm.xlu0 %1996, %v2121_v6  }
  0xc7   :  { %679 = vperm.xlu1 %1994, %v2169_v14   ;;  %v2334_v57 = vpop.permute.xlu1 %288  ;;  %v2336_v58 = vpop.permute.xlu0 %296 }
  0xc8   :  { %772 = vperm.xlu0 %1996, %v2133_v8  }
  0xcb   :  { %687 = vperm.xlu1 %1994, %v2181_v16   ;;  %v2340_v59 = vpop.permute.xlu1 %292  ;;  %v2342_v60 = vpop.permute.xlu0 %304 }
  0xcc   :  { %780 = vperm.xlu0 %1996, %v2145_v10  }
  0xcf   :  { %1995 = vset.pattern.permute.xlu1 %v2061_v54  ;;  %v2345_v61 = vpop.permute.xlu1 %300  ;;  %v2347_v62 = vpop.permute.xlu0 %312 }
  0xd0   :  { %748 = vperm.xlu1 %1995, %v2097_v1   ;;  %788 = vperm.xlu0 %1996, %v2157_v12  }
  0xd3   :  { %v2351_v63 = vpop.permute.xlu1 %308  ;;  %v2353_v2 = vpop.permute.xlu0 %320 }
  0xd4   :  { %3694 = vst [vmem:[#allocation5_spill] sm:$0xff] %v2351_v63  ;;  %3695 = vst [vmem:[#allocation6_spill] sm:$0xff] %v2353_v2  ;;  %756 = vperm.xlu1 %1995, %v2092_v0   ;;  %796 = vperm.xlu0 %1996, %v2169_v14   ;;  %v2066_v63 = vmov 11  }
  0xd7   :  { %v2357_v17 = vpop.permute.xlu1 %316  ;;  %v2359_v18 = vpop.permute.xlu0 %328 }
  0xd8   :  { %3696 = vst [vmem:[#allocation7_spill] sm:$0xff] %v2357_v17  ;;  %3697 = vst [vmem:[#allocation8_spill] sm:$0xff] %v2359_v18  ;;  %760 = vperm.xlu1 %1995, %v2104_v3   ;;  %804 = vperm.xlu0 %1996, %v2181_v16  }
  0xdb   :  { %v2363_v19 = vpop.permute.xlu1 %324  ;;  %v2365_v21 = vpop.permute.xlu0 %336 }
  0xdc   :  { %3698 = vst [vmem:[#allocation9_spill] sm:$0xff] %v2363_v19  ;;  %3699 = vst [vmem:[#allocation10_spill] sm:$0xff] %v2365_v21  ;;  %768 = vperm.xlu1 %1995, %v2116_v5   ;;  %1997 = vset.pattern.permute.xlu0 %v2062_v37 }
  0xdd   :  { %865 = vperm.xlu0 %1997, %v2097_v1  }
  0xdf   :  { %v2369_v54 = vpop.permute.xlu1 %332 }
  0xe0   :  { %3700 = vst [vmem:[#allocation11_spill] sm:$0xff] %v2369_v54  ;;  %776 = vperm.xlu1 %1995, %v2128_v7   ;;  %v2372_v17 = vpop.permute.xlu0 %397 }
  0xe1   :  { %3701 = vst [vmem:[#allocation12_spill] sm:$0xff] %v2372_v17  ;;  %877 = vperm.xlu0 %1997, %v2104_v3  }
  0xe3   :  { %v2375_v18 = vpop.permute.xlu1 %340 }
  0xe4   :  { %3702 = vst [vmem:[#allocation13_spill] sm:$0xff] %v2375_v18  ;;  %784 = vperm.xlu1 %1995, %v2140_v9   ;;  %v2378_v19 = vpop.permute.xlu0 %409 }
  0xe5   :  { %3703 = vst [vmem:[#allocation14_spill] sm:$0xff] %v2378_v19  ;;  %885 = vperm.xlu0 %1997, %v2116_v5  }
  0xe8   :  { %792 = vperm.xlu1 %1995, %v2152_v11   ;;  %v2382_v21 = vpop.permute.xlu1 %401  ;;  %v2384_v2 = vpop.permute.xlu0 %417 }
  0xe9   :  { %3704 = vst [vmem:[#allocation15_spill] sm:$0xff] %v2382_v21  ;;  %3705 = vst [vmem:[#allocation16_spill] sm:$0xff] %v2384_v2  ;;  %893 = vperm.xlu0 %1997, %v2128_v7  }
  0xec   :  { %800 = vperm.xlu1 %1995, %v2164_v13   ;;  %v2388_v17 = vpop.permute.xlu1 %405  ;;  %v2390_v54 = vpop.permute.xlu0 %425 }
  0xed   :  { %3706 = vst [vmem:[#allocation17_spill] sm:$0xff] %v2388_v17  ;;  %3707 = vst [vmem:[#allocation18_spill] sm:$0xff] %v2390_v54  ;;  %901 = vperm.xlu0 %1997, %v2140_v9  }
  0xf0   :  { %808 = vperm.xlu1 %1995, %v2176_v15   ;;  %v2394_v19 = vpop.permute.xlu1 %413  ;;  %v2396_v18 = vpop.permute.xlu0 %433 }
  0xf1   :  { %3708 = vst [vmem:[#allocation19_spill] sm:$0xff] %v2394_v19  ;;  %3709 = vst [vmem:[#allocation20_spill] sm:$0xff] %v2396_v18  ;;  %909 = vperm.xlu0 %1997, %v2152_v11  }
  0xf4   :  { %1998 = vset.pattern.permute.xlu1 %v2062_v37  ;;  %v2399_v2 = vpop.permute.xlu1 %421  ;;  %v2401_v21 = vpop.permute.xlu0 %441  ;;  %v2063_v37 = vmov 8  }
  0xf5   :  { %3710 = vst [vmem:[#allocation21_spill] sm:$0xff] %v2399_v2  ;;  %3711 = vst [vmem:[#allocation22_spill] sm:$0xff] %v2401_v21  ;;  %869 = vperm.xlu1 %1998, %v2109_v4   ;;  %917 = vperm.xlu0 %1997, %v2164_v13  }
  0xf8   :  { %v2405_v54 = vpop.permute.xlu1 %429  ;;  %v2407_v17 = vpop.permute.xlu0 %449 }
  0xf9   :  { %3712 = vst [vmem:[#allocation23_spill] sm:$0xff] %v2405_v54  ;;  %3713 = vst [vmem:[#allocation24_spill] sm:$0xff] %v2407_v17  ;;  %873 = vperm.xlu1 %1998, %v2092_v0   ;;  %925 = vperm.xlu0 %1997, %v2176_v15  }
  0xfc   :  { %v2411_v18 = vpop.permute.xlu1 %437  ;;  %v2413_v19 = vpop.permute.xlu0 %457 }
  0xfd   :  { %3714 = vst [vmem:[#allocation25_spill] sm:$0xff] %v2411_v18  ;;  %3715 = vst [vmem:[#allocation26_spill] sm:$0xff] %v2413_v19  ;;  %881 = vperm.xlu1 %1998, %v2121_v6   ;;  %2000 = vset.pattern.permute.xlu0 %v2063_v37 }
  0xfe   :  { %986 = vperm.xlu0 %2000, %v2109_v4  }
 0x100   :  { %v2417_v21 = vpop.permute.xlu1 %445 }
 0x101   :  { %3716 = vst [vmem:[#allocation27_spill] sm:$0xff] %v2417_v21  ;;  %889 = vperm.xlu1 %1998, %v2133_v8   ;;  %v2420_v54 = vpop.permute.xlu0 %518 }
 0x102   :  { %3717 = vst [vmem:[#allocation28_spill] sm:$0xff] %v2420_v54  ;;  %998 = vperm.xlu0 %2000, %v2121_v6  }
 0x104   :  { %v2423_v17 = vpop.permute.xlu1 %453 }
 0x105   :  { %3718 = vst [vmem:[#allocation29_spill] sm:$0xff] %v2423_v17  ;;  %897 = vperm.xlu1 %1998, %v2145_v10   ;;  %v2426_v18 = vpop.permute.xlu0 %530 }
 0x106   :  { %3719 = vst [vmem:[#allocation30_spill] sm:$0xff] %v2426_v18  ;;  %1006 = vperm.xlu0 %2000, %v2133_v8  }
 0x109   :  { %905 = vperm.xlu1 %1998, %v2157_v12   ;;  %v2430_v19 = vpop.permute.xlu1 %514  ;;  %v2432_v2 = vpop.permute.xlu0 %538 }
 0x10a   :  { %3720 = vst [vmem:[#allocation31_spill] sm:$0xff] %v2430_v19  ;;  %3721 = vst [vmem:[#allocation32_spill] sm:$0xff] %v2432_v2  ;;  %1014 = vperm.xlu0 %2000, %v2145_v10  }
 0x10d   :  { %913 = vperm.xlu1 %1998, %v2169_v14   ;;  %v2436_v54 = vpop.permute.xlu1 %522  ;;  %v2438_v21 = vpop.permute.xlu0 %546 }
 0x10e   :  { %3722 = vst [vmem:[#allocation33_spill] sm:$0xff] %v2436_v54  ;;  %3723 = vst [vmem:[#allocation34_spill] sm:$0xff] %v2438_v21  ;;  %1022 = vperm.xlu0 %2000, %v2157_v12  }
 0x111   :  { %921 = vperm.xlu1 %1998, %v2181_v16   ;;  %v2442_v18 = vpop.permute.xlu1 %526  ;;  %v2444_v17 = vpop.permute.xlu0 %554 }
 0x112   :  { %3724 = vst [vmem:[#allocation35_spill] sm:$0xff] %v2442_v18  ;;  %3725 = vst [vmem:[#allocation36_spill] sm:$0xff] %v2444_v17  ;;  %1030 = vperm.xlu0 %2000, %v2169_v14   ;;  %v2064_v18 = vmov 9  }
 0x115   :  { %1999 = vset.pattern.permute.xlu1 %v2063_v37  ;;  %v2447_v2 = vpop.permute.xlu1 %534  ;;  %v2449_v19 = vpop.permute.xlu0 %562 }
 0x116   :  { %3726 = vst [vmem:[#allocation37_spill] sm:$0xff] %v2447_v2  ;;  %3727 = vst [vmem:[#allocation38_spill] sm:$0xff] %v2449_v19  ;;  %982 = vperm.xlu1 %1999, %v2097_v1   ;;  %1038 = vperm.xlu0 %2000, %v2181_v16  }
 0x119   :  { %v2453_v21 = vpop.permute.xlu1 %542  ;;  %v2455_v54 = vpop.permute.xlu0 %570 }
 0x11a   :  { %3728 = vst [vmem:[#allocation39_spill] sm:$0xff] %v2453_v21  ;;  %3729 = vst [vmem:[#allocation40_spill] sm:$0xff] %v2455_v54  ;;  %990 = vperm.xlu1 %1999, %v2092_v0   ;;  %2001 = vset.pattern.permute.xlu0 %v2064_v18 }
 0x11b   :  { %1099 = vperm.xlu0 %2001, %v2097_v1  }
 0x11d   :  { %v2459_v17 = vpop.permute.xlu1 %550 }
 0x11e   :  { %3730 = vst [vmem:[#allocation41_spill] sm:$0xff] %v2459_v17  ;;  %994 = vperm.xlu1 %1999, %v2104_v3   ;;  %v2462_v37 = vpop.permute.xlu0 %631 }
 0x11f   :  { %3731 = vst [vmem:[#allocation42_spill] sm:$0xff] %v2462_v37  ;;  %1111 = vperm.xlu0 %2001, %v2104_v3  }
 0x121   :  { %v2465_v19 = vpop.permute.xlu1 %558 }
 0x122   :  { %3732 = vst [vmem:[#allocation43_spill] sm:$0xff] %v2465_v19  ;;  %1002 = vperm.xlu1 %1999, %v2116_v5   ;;  %v2468_v21 = vpop.permute.xlu0 %643 }
 0x123   :  { %3733 = vst [vmem:[#allocation44_spill] sm:$0xff] %v2468_v21  ;;  %1119 = vperm.xlu0 %2001, %v2116_v5  }
 0x125   :  { %v2471_v54 = vpop.permute.xlu1 %566 }
 0x126   :  { %3734 = vst [vmem:[#allocation45_spill] sm:$0xff] %v2471_v54  ;;  %1010 = vperm.xlu1 %1999, %v2128_v7   ;;  %v2474_v2 = vpop.permute.xlu0 %651 }
 0x127   :  { %3735 = vst [vmem:[#allocation46_spill] sm:$0xff] %v2474_v2  ;;  %1127 = vperm.xlu0 %2001, %v2128_v7  }
 0x129   :  { %v2477_v17 = vpop.permute.xlu1 %574 }
 0x12a   :  { %3736 = vst [vmem:[#allocation47_spill] sm:$0xff] %v2477_v17  ;;  %1018 = vperm.xlu1 %1999, %v2140_v9   ;;  %v2480_v37 = vpop.permute.xlu0 %659 }
 0x12b   :  { %3737 = vst [vmem:[#allocation48_spill] sm:$0xff] %v2480_v37  ;;  %1135 = vperm.xlu0 %2001, %v2140_v9  }
 0x12e   :  { %1026 = vperm.xlu1 %1999, %v2152_v11   ;;  %v2484_v21 = vpop.permute.xlu1 %635  ;;  %v2486_v19 = vpop.permute.xlu0 %667 }
 0x12f   :  { %3738 = vst [vmem:[#allocation49_spill] sm:$0xff] %v2484_v21  ;;  %3739 = vst [vmem:[#allocation50_spill] sm:$0xff] %v2486_v19  ;;  %1143 = vperm.xlu0 %2001, %v2152_v11  }
 0x132   :  { %1034 = vperm.xlu1 %1999, %v2164_v13   ;;  %v2490_v2 = vpop.permute.xlu1 %639  ;;  %v2492_v54 = vpop.permute.xlu0 %675 }
 0x133   :  { %3740 = vst [vmem:[#allocation51_spill] sm:$0xff] %v2490_v2  ;;  %3741 = vst [vmem:[#allocation52_spill] sm:$0xff] %v2492_v54  ;;  %1151 = vperm.xlu0 %2001, %v2164_v13   ;;  %v2065_v2 = vmov 10  }
 0x136   :  { %1042 = vperm.xlu1 %1999, %v2176_v15   ;;  %v2496_v37 = vpop.permute.xlu1 %647  ;;  %v2498_v17 = vpop.permute.xlu0 %683 }
 0x137   :  { %3742 = vst [vmem:[#allocation53_spill] sm:$0xff] %v2496_v37  ;;  %3743 = vst [vmem:[#allocation54_spill] sm:$0xff] %v2498_v17  ;;  %1159 = vperm.xlu0 %2001, %v2176_v15  }
 0x13a   :  { %2002 = vset.pattern.permute.xlu1 %v2064_v18  ;;  %v2501_v19 = vpop.permute.xlu1 %655  ;;  %v2503_v21 = vpop.permute.xlu0 %691 }
 0x13b   :  { %3744 = vst [vmem:[#allocation55_spill] sm:$0xff] %v2501_v19  ;;  %3745 = vst [vmem:[#allocation56_spill] sm:$0xff] %v2503_v21  ;;  %1103 = vperm.xlu1 %2002, %v2109_v4   ;;  %2004 = vset.pattern.permute.xlu0 %v2065_v2 }
 0x13c   :  { %1220 = vperm.xlu0 %2004, %v2109_v4  }
 0x13e   :  { %v2507_v54 = vpop.permute.xlu1 %663 }
 0x13f   :  { %3746 = vst [vmem:[#allocation57_spill] sm:$0xff] %v2507_v54  ;;  %1107 = vperm.xlu1 %2002, %v2092_v0   ;;  %v2510_v37 = vpop.permute.xlu0 %752 }
 0x140   :  { %3747 = vst [vmem:[#allocation58_spill] sm:$0xff] %v2510_v37  ;;  %1232 = vperm.xlu0 %2004, %v2121_v6  }
 0x142   :  { %v2513_v17 = vpop.permute.xlu1 %671 }
 0x143   :  { %3748 = vst [vmem:[#allocation59_spill] sm:$0xff] %v2513_v17  ;;  %1115 = vperm.xlu1 %2002, %v2121_v6   ;;  %v2516_v18 = vpop.permute.xlu0 %764 }
 0x144   :  { %3749 = vst [vmem:[#allocation60_spill] sm:$0xff] %v2516_v18  ;;  %1240 = vperm.xlu0 %2004, %v2133_v8  }
 0x146   :  { %v2519_v21 = vpop.permute.xlu1 %679 }
 0x147   :  { %3750 = vst [vmem:[#allocation61_spill] sm:$0xff] %v2519_v21  ;;  %1123 = vperm.xlu1 %2002, %v2133_v8   ;;  %v2522_v19 = vpop.permute.xlu0 %772 }
 0x148   :  { %3751 = vst [vmem:[#allocation62_spill] sm:$0xff] %v2522_v19  ;;  %1248 = vperm.xlu0 %2004, %v2145_v10  }
 0x14a   :  { %v2525_v54 = vpop.permute.xlu1 %687 }
 0x14b   :  { %3752 = vst [vmem:[#allocation63_spill] sm:$0xff] %v2525_v54  ;;  %1131 = vperm.xlu1 %2002, %v2145_v10   ;;  %v2528_v37 = vpop.permute.xlu0 %780 }
 0x14c   :  { %3753 = vst [vmem:[#allocation64_spill] sm:$0xff] %v2528_v37  ;;  %1256 = vperm.xlu0 %2004, %v2157_v12  }
 0x14f   :  { %1139 = vperm.xlu1 %2002, %v2157_v12   ;;  %v2532_v18 = vpop.permute.xlu1 %748  ;;  %v2534_v17 = vpop.permute.xlu0 %788 }
 0x150   :  { %3754 = vst [vmem:[#allocation65_spill] sm:$0xff] %v2534_v17  ;;  %1264 = vperm.xlu0 %2004, %v2169_v14  }
 0x153   :  { %1147 = vperm.xlu1 %2002, %v2169_v14   ;;  %v2538_v19 = vpop.permute.xlu1 %756  ;;  %v2540_v21 = vpop.permute.xlu0 %796 }
 0x154   :  { %3755 = vst [vmem:[#allocation66_spill] sm:$0xff] %v2538_v19  ;;  %3756 = vst [vmem:[#allocation67_spill] sm:$0xff] %v2540_v21  ;;  %1272 = vperm.xlu0 %2004, %v2181_v16  }
 0x157   :  { %1155 = vperm.xlu1 %2002, %v2181_v16   ;;  %v2544_v37 = vpop.permute.xlu1 %760  ;;  %v2546_v54 = vpop.permute.xlu0 %804 }
 0x158   :  { %3757 = vst [vmem:[#allocation68_spill] sm:$0xff] %v2544_v37  ;;  %3758 = vst [vmem:[#allocation69_spill] sm:$0xff] %v2546_v54  ;;  %2005 = vset.pattern.permute.xlu0 %v2066_v63 }
 0x159   :  { %1333 = vperm.xlu0 %2005, %v2097_v1  }
 0x15b   :  { %2003 = vset.pattern.permute.xlu1 %v2065_v2  ;;  %v2549_v17 = vpop.permute.xlu1 %768 }
 0x15c   :  { %3759 = vst [vmem:[#allocation70_spill] sm:$0xff] %v2549_v17  ;;  %1216 = vperm.xlu1 %2003, %v2097_v1   ;;  %v2552_v19 = vpop.permute.xlu0 %865 }
 0x15d   :  { %3760 = vst [vmem:[#allocation71_spill] sm:$0xff] %v2552_v19  ;;  %1345 = vperm.xlu0 %2005, %v2104_v3  }
 0x15f   :  { %v2555_v21 = vpop.permute.xlu1 %776 }
 0x160   :  { %3761 = vst [vmem:[#allocation72_spill] sm:$0xff] %v2555_v21  ;;  %1224 = vperm.xlu1 %2003, %v2092_v0   ;;  %v2558_v37 = vpop.permute.xlu0 %877 }
 0x161   :  { %3762 = vst [vmem:[#allocation73_spill] sm:$0xff] %v2558_v37  ;;  %1353 = vperm.xlu0 %2005, %v2116_v5  }
 0x163   :  { %v2561_v54 = vpop.permute.xlu1 %784 }
 0x164   :  { %3763 = vst [vmem:[#allocation74_spill] sm:$0xff] %v2561_v54  ;;  %1228 = vperm.xlu1 %2003, %v2104_v3   ;;  %v2564_v2 = vpop.permute.xlu0 %885 }
 0x165   :  { %3764 = vst [vmem:[#allocation75_spill] sm:$0xff] %v2564_v2  ;;  %1361 = vperm.xlu0 %2005, %v2128_v7  }
 0x167   :  { %v2567_v17 = vpop.permute.xlu1 %792 }
 0x168   :  { %3765 = vst [vmem:[#allocation76_spill] sm:$0xff] %v2567_v17  ;;  %1236 = vperm.xlu1 %2003, %v2116_v5   ;;  %v2570_v19 = vpop.permute.xlu0 %893 }
 0x169   :  { %3766 = vst [vmem:[#allocation77_spill] sm:$0xff] %v2570_v19  ;;  %1369 = vperm.xlu0 %2005, %v2140_v9  }
 0x16b   :  { %v2573_v21 = vpop.permute.xlu1 %800 }
 0x16c   :  { %3767 = vst [vmem:[#allocation78_spill] sm:$0xff] %v2573_v21  ;;  %1244 = vperm.xlu1 %2003, %v2128_v7   ;;  %v2576_v37 = vpop.permute.xlu0 %901 }
 0x16d   :  { %3768 = vst [vmem:[#allocation79_spill] sm:$0xff] %v2576_v37  ;;  %1377 = vperm.xlu0 %2005, %v2152_v11  }
 0x16f   :  { %v2579_v54 = vpop.permute.xlu1 %808 }
 0x170   :  { %3769 = vst [vmem:[#allocation80_spill] sm:$0xff] %v2579_v54  ;;  %1252 = vperm.xlu1 %2003, %v2140_v9   ;;  %v2582_v2 = vpop.permute.xlu0 %909  ;;  %v3680_v54 = vmov 12  }
 0x171   :  { %3770 = vst [vmem:[#allocation81_spill] sm:$0xff] %v2582_v2  ;;  %1385 = vperm.xlu0 %2005, %v2164_v13  }
 0x174   :  { %1260 = vperm.xlu1 %2003, %v2152_v11   ;;  %v2586_v19 = vpop.permute.xlu1 %869  ;;  %v2588_v17 = vpop.permute.xlu0 %917 }
 0x175   :  { %3771 = vst [vmem:[#allocation82_spill] sm:$0xff] %v2586_v19  ;;  %3772 = vst [vmem:[#allocation83_spill] sm:$0xff] %v2588_v17  ;;  %1393 = vperm.xlu0 %2005, %v2176_v15  }
 0x178   :  { %1268 = vperm.xlu1 %2003, %v2164_v13   ;;  %v2592_v37 = vpop.permute.xlu1 %873  ;;  %v2594_v21 = vpop.permute.xlu0 %925 }
 0x179   :  { %3773 = vst [vmem:[#allocation84_spill] sm:$0xff] %v2592_v37  ;;  %3774 = vst [vmem:[#allocation85_spill] sm:$0xff] %v2594_v21  ;;  %2008 = vset.pattern.permute.xlu0 %v3680_v54 }
 0x17a   :  { %1454 = vperm.xlu0 %2008, %v2109_v4  }
 0x17c   :  { %1276 = vperm.xlu1 %2003, %v2176_v15   ;;  %v2599_v2 = vpop.permute.xlu1 %881 }
 0x17d   :  { %3775 = vst [vmem:[#allocation86_spill] sm:$0xff] %v2599_v2  ;;  %v2601_v19 = vpop.permute.xlu0 %986 }
 0x17e   :  { %3776 = vst [vmem:[#allocation87_spill] sm:$0xff] %v2601_v19  ;;  %1466 = vperm.xlu0 %2008, %v2121_v6  }
 0x180   :  { %2006 = vset.pattern.permute.xlu1 %v2066_v63  ;;  %v2604_v17 = vpop.permute.xlu1 %889 }
 0x181   :  { %3777 = vst [vmem:[#allocation88_spill] sm:$0xff] %v2604_v17  ;;  %1337 = vperm.xlu1 %2006, %v2109_v4   ;;  %v2607_v13 = vpop.permute.xlu0 %998  ;;  %v1948_v4 = vld [vmem:[%s3678_s1] ss:$0 sm:$0xff] }
 0x182   :  { %3778 = vst [vmem:[#allocation89_spill] sm:$0xff] %v2607_v13  ;;  %1474 = vperm.xlu0 %2008, %v2133_v8   ;;  %v117_v2 = vsub.f32 %v2245_v26, %v1948_v4  ;;  %v121_v21 = vsub.f32 %v2257_v30, %v1948_v4 }
 0x184   :  { %v2610_v54 = vpop.permute.xlu1 %897 }
 0x185   :  { %3779 = vst [vmem:[#allocation90_spill] sm:$0xff] %v2610_v54  ;;  %1341 = vperm.xlu1 %2006, %v2092_v0   ;;  %v2613_v15 = vpop.permute.xlu0 %1006  ;;  %v113_v54 = vsub.f32 %v2234_v22, %v1948_v4 }
 0x186   :  { %3780 = vst [vmem:[#allocation91_spill] sm:$0xff] %v2613_v15  ;;  %1482 = vperm.xlu0 %2008, %v2145_v10   ;;  %v115_v15 = vsub.f32 %v2231_v20, %v1948_v4  ;;  %v2643_v20 = vld [vmem:[%s3678_s1 + $0x1] ss:$0 sm:$0xff] }
 0x188   :  { %v2616_v37 = vpop.permute.xlu1 %905  ;;  %v131_v22 = vand.u32 2147483647, %v115_v15  ;;  %v123_v15 = vsub.f32 %v2263_v32, %v1948_v4 }
 0x189   :  { %3781 = vst [vmem:[#allocation92_spill] sm:$0xff] %v2616_v37  ;;  %1349 = vperm.xlu1 %2006, %v2121_v6   ;;  %v2619_v63 = vpop.permute.xlu0 %1014  ;;  %v116_v37 = vsub.f32 %v2237_v23, %v1948_v4  ;;  %v114_v6 = vsub.f32 %v2240_v24, %v1948_v4  ;;  %v129_v23 = vand.u32 2147483647, %v113_v54  ;;  %v230_v54 = vsub.f32 %v2282_v39, %v2643_v20 }
 0x18a   :  { %3782 = vst [vmem:[#allocation93_spill] sm:$0xff] %v2619_v63  ;;  %1490 = vperm.xlu0 %2008, %v2157_v12   ;;  %v118_v63 = vsub.f32 %v2243_v25, %v1948_v4  ;;  %v119_v25 = vsub.f32 %v2251_v28, %v1948_v4  ;;  %v124_v28 = vsub.f32 %v2261_v31, %v1948_v4 }
 0x18b   :  { %v132_v24 = vand.u32 2147483647, %v116_v37  ;;  %v130_v26 = vand.u32 2147483647, %v114_v6  ;;  %v233_v39 = vsub.f32 %v2288_v41, %v2643_v20  ;;  %v127_v6 = vsub.f32 %v2275_v36, %v1948_v4 }
 0x18c   :  { %v2625_v13 = vpop.permute.xlu1 %913  ;;  %v2667_v30 = vand.u32 2147483647, %v119_v25  ;;  %v246_v41 = vand.u32 2147483647, %v230_v54 }
 0x18d   :  { %3783 = vst [vmem:[#allocation94_spill] sm:$0xff] %v2625_v13  ;;  %1357 = vperm.xlu1 %2006, %v2133_v8   ;;  %v2631_v17 = vpop.permute.xlu0 %1022  ;;  %v120_v8 = vsub.f32 %v2249_v27, %v1948_v4  ;;  %v2649_v13 = vand.u32 2147483647, %v118_v63  ;;  %v122_v27 = vsub.f32 %v2255_v29, %v1948_v4  ;;  %v234_v63 = vsub.f32 %v2291_v42, %v2643_v20 }
 0x18e   :  { %3784 = vst [vmem:[#allocation95_spill] sm:$0xff] %v2631_v17  ;;  %1498 = vperm.xlu0 %2008, %v2169_v14   ;;  %v235_v42 = vsub.f32 %v2294_v43, %v2643_v20  ;;  %v143_v54 = vand.u32 2147483647, %v127_v6  ;;  %v236_v43 = vsub.f32 %v2297_v44, %v2643_v20  ;;  %v240_v44 = vsub.f32 %v2309_v48, %v2643_v20 }
 0x18f   :  { %v2658_v37 = vand.u32 2147483647, %v120_v8  ;;  %v2676_v32 = vand.u32 2147483647, %v122_v27  ;;  %v3682_v8 = vmov 13   ;;  %v243_v48 = vsub.f32 %v2317_v51, %v2643_v20 }
 0x190   :  { %v2637_v19 = vpop.permute.xlu1 %921  ;;  %v2687_v27 = vand.u32 2147483647, %v124_v28 }
 0x191   :  { %3785 = vst [vmem:[#allocation96_spill] sm:$0xff] %v2637_v19  ;;  %1365 = vperm.xlu1 %2006, %v2145_v10   ;;  %v2647_v17 = vpop.permute.xlu0 %1030  ;;  %v133_v19 = vand.u32 2147483647, %v117_v2  ;;  %v231_v10 = vsub.f32 %v2279_v38, %v2643_v20  ;;  %v232_v2 = vsub.f32 %v2285_v40, %v2643_v20  ;;  %v126_v38 = vsub.f32 %v2267_v33, %v1948_v4 }
 0x192   :  { %3786 = vst [vmem:[#allocation97_spill] sm:$0xff] %v2647_v17  ;;  %1506 = vperm.xlu0 %2008, %v2181_v16   ;;  %v125_v40 = vsub.f32 %v2269_v34, %v1948_v4  ;;  %v2682_v33 = vand.u32 2147483647, %v121_v21  ;;  %v250_v21 = vand.u32 2147483647, %v234_v63  ;;  %v239_v63 = vsub.f32 %v2305_v47, %v2643_v20 }
 0x193   :  { %v247_v25 = vand.u32 2147483647, %v231_v10  ;;  %v248_v34 = vand.u32 2147483647, %v232_v2  ;;  %v2692_v36 = vand.u32 2147483647, %v126_v38  ;;  %v242_v47 = vsub.f32 %v2315_v50, %v2643_v20 }
 0x194   :  { %v251_v2 = vand.u32 2147483647, %v235_v42 }
 0x195   :  { %1373 = vperm.xlu1 %2006, %v2157_v12   ;;  %v2665_v29 = vpop.permute.xlu1 %982  ;;  %v2674_v31 = vpop.permute.xlu0 %1038  ;;  %v128_v12 = vsub.f32 %v2273_v35, %v1948_v4  ;;  %v249_v4 = vand.u32 2147483647, %v233_v39  ;;  %v2700_v28 = vadd.f32 %v247_v25, %v130_v26  ;;  %v2705_v38 = vadd.f32 %v248_v34, %v131_v22 }
 0x196   :  { %3787 = vst [vmem:[#allocation98_spill] sm:$0xff] %v2665_v29  ;;  %3788 = vst [vmem:[#allocation99_spill] sm:$0xff] %v2674_v31  ;;  %2009 = vset.pattern.permute.xlu0 %v3682_v8  ;;  %v139_v29 = vand.u32 2147483647, %v123_v15  ;;  %v141_v8 = vand.u32 2147483647, %v125_v40  ;;  %v262_v15 = vadd.f32 %v246_v41, %v129_v23  ;;  %v238_v39 = vsub.f32 %v2303_v46, %v2643_v20 }
 0x197   :  { %1567 = vperm.xlu0 %2009, %v2097_v1   ;;  %v2694_v10 = vand.u32 2147483647, %v128_v12  ;;  %v2716_v23 = vld [vmem:[%s3678_s1 + $0x2] ss:$0 sm:$0xff]  ;;  %v265_v22 = vadd.f32 %v249_v4, %v132_v24  ;;  %v266_v26 = vadd.f32 %v250_v21, %v133_v19  ;;  %v241_v46 = vsub.f32 %v2311_v49, %v2643_v20 }
 0x198   :  { %v252_v40 = vand.u32 2147483647, %v236_v43  ;;  %v244_v12 = vsub.f32 %v2321_v52, %v2643_v20  ;;  %v2734_v19 = vadd.f32 %v251_v2, %v2649_v13  ;;  %v347_v49 = vsub.f32 %v2328_v55, %v2716_v23 }
 0x199   :  { %1381 = vperm.xlu1 %2006, %v2169_v14   ;;  %v2690_v35 = vpop.permute.xlu1 %990  ;;  %v237_v14 = vsub.f32 %v2299_v45, %v2643_v20  ;;  %v348_v50 = vsub.f32 %v2330_v56, %v2716_v23  ;;  %v254_v51 = vand.u32 2147483647, %v238_v39  ;;  %v255_v25 = vand.u32 2147483647, %v239_v63 }
 0x19a   :  { %3789 = vst [vmem:[#allocation100_spill] sm:$0xff] %v2690_v35  ;;  %v2698_v31 = vpop.permute.xlu0 %1099  ;;  %v256_v52 = vand.u32 2147483647, %v240_v44  ;;  %v257_v13 = vand.u32 2147483647, %v241_v46  ;;  %v351_v55 = vsub.f32 %v2336_v58, %v2716_v23  ;;  %v350_v56 = vsub.f32 %v2340_v59, %v2716_v23 }
 0x19b   :  { %3790 = vst [vmem:[#allocation101_spill] sm:$0xff] %v2698_v31  ;;  %1579 = vperm.xlu0 %2009, %v2104_v3   ;;  %v253_v24 = vand.u32 2147483647, %v237_v14  ;;  %v258_v42 = vand.u32 2147483647, %v242_v47  ;;  %v353_v58 = vsub.f32 %v2342_v60, %v2716_v23  ;;  %v270_v59 = vadd.f32 %v254_v51, %v2682_v33 }
 0x19c   :  { %v259_v34 = vand.u32 2147483647, %v243_v48  ;;  %v260_v4 = vand.u32 2147483647, %v244_v12  ;;  %v363_v2 = vand.u32 2147483647, %v347_v49  ;;  %v2767_v44 = vadd.f32 %v257_v13, %v2687_v27 }
 0x19d   :  { %1389 = vperm.xlu1 %2006, %v2181_v16   ;;  %v2719_v45 = vpop.permute.xlu1 %994  ;;  %v245_v16 = vsub.f32 %v2323_v53, %v2643_v20  ;;  %v349_v53 = vsub.f32 %v2334_v57, %v2716_v23  ;;  %v3791_v20 = vmov 12   ;;  %v2755_v43 = vadd.f32 %v253_v24, %v2658_v37  ;;  %v3794_v48 = vld [vmem:[#allocation7_spill] sm:$0xff]  ;;  %v3795_v49 = vld [vmem:[#allocation8_spill] sm:$0xff] }
 0x19e   :  { %v2731_v6 = vpop.permute.xlu0 %1111  ;;  %v364_v14 = vand.u32 2147483647, %v348_v50  ;;  %v274_v37 = vadd.f32 %v258_v42, %v141_v8  ;;  %v367_v46 = vand.u32 2147483647, %v351_v55  ;;  %v366_v47 = vand.u32 2147483647, %v350_v56 }
 0x19f   :  { %1587 = vperm.xlu0 %2009, %v2116_v5   ;;  %v268_v5 = vadd.f32 %v252_v40, %v2667_v30  ;;  %v261_v21 = vand.u32 2147483647, %v245_v16  ;;  %v272_v30 = vadd.f32 %v256_v52, %v139_v29  ;;  %v365_v39 = vand.u32 2147483647, %v349_v53  ;;  %v3798_v53 = vld [vmem:[#allocation11_spill] sm:$0xff]  ;;  %v3799_v13 = vld [vmem:[#allocation12_spill] sm:$0xff] }
 0x1a0   :  { %v2771_v60 = vadd.f32 %v259_v34, %v2692_v36  ;;  %v352_v29 = vsub.f32 %v2345_v61, %v2716_v23  ;;  %v379_v27 = vadd.f32 %v363_v2, %v262_v15  ;;  %v2783_v8 = vadd.f32 %v364_v14, %v2700_v28  ;;  %v2790_v36 = vld [vmem:[%s3678_s1 + $0x3] ss:$0 sm:$0xff]  ;;  %v3793_v28 = vld [vmem:[#allocation6_spill] sm:$0xff] }
 0x1a1   :  { %2007 = vset.pattern.permute.xlu1 %v3791_v20  ;;  %v2744_v41 = vpop.permute.xlu1 %1002  ;;  %v369_v40 = vand.u32 2147483647, %v353_v58  ;;  %v3792_v61 = vld [vmem:[#allocation5_spill] sm:$0xff]  ;;  %v357_v15 = vsub.f32 %v3793_v28, %v2716_v23  ;;  %v356_v12 = vsub.f32 %v3794_v48, %v2716_v23  ;;  %v2804_v16 = vadd.f32 %v367_v46, %v266_v26  ;;  %v3802_v58 = vld [vmem:[#allocation15_spill] sm:$0xff] }
 0x1a2   :  { %1450 = vperm.xlu1 %2007, %v2097_v1   ;;  %v2752_v57 = vpop.permute.xlu0 %1119  ;;  %v2762_v1 = vadd.f32 %v255_v25, %v2676_v32  ;;  %v2776_v32 = vadd.f32 %v261_v21, %v2694_v10  ;;  %v2794_v10 = vadd.f32 %v365_v39, %v2705_v38  ;;  %v382_v24 = vadd.f32 %v366_v47, %v265_v22  ;;  %v3796_v38 = vld [vmem:[#allocation9_spill] sm:$0xff]  ;;  %v3797_v25 = vld [vmem:[#allocation10_spill] sm:$0xff] }
 0x1a3   :  { %1595 = vperm.xlu0 %2009, %v2128_v7   ;;  %v2773_v7 = vadd.f32 %v260_v4, %v143_v54  ;;  %v354_v54 = vsub.f32 %v3792_v61, %v2716_v23  ;;  %v358_v50 = vsub.f32 %v3796_v38, %v2716_v23  ;;  %v368_v51 = vand.u32 2147483647, %v352_v29  ;;  %v3800_v56 = vld [vmem:[#allocation13_spill] sm:$0xff]  ;;  %v3803_v29 = vld [vmem:[#allocation16_spill] sm:$0xff]  ;;  %v3806_v38 = vld [vmem:[#allocation18_spill] sm:$0xff] }
 0x1a4   :  { %v361_v52 = vsub.f32 %v3797_v25, %v2716_v23  ;;  %v360_v20 = vsub.f32 %v3798_v53, %v2716_v23  ;;  %v464_v26 = vsub.f32 %v3799_v13, %v2790_v36  ;;  %v2819_v22 = vadd.f32 %v369_v40, %v268_v5  ;;  %v2850_v25 = vld [vmem:[%s3677_s0 + $0x68] sm:$0xff] }
 0x1a5   :  { %v2764_v63 = vpop.permute.xlu1 %1010  ;;  %v362_v34 = vsub.f32 %v3800_v56, %v2716_v23  ;;  %v370_v21 = vand.u32 2147483647, %v354_v54  ;;  %v373_v2 = vand.u32 2147483647, %v357_v15  ;;  %v372_v14 = vand.u32 2147483647, %v356_v12 }
 0x1a6   :  { %1458 = vperm.xlu1 %2007, %v2092_v0   ;;  %v2780_v33 = vpop.permute.xlu0 %1127  ;;  %v355_v0 = vsub.f32 %v2347_v62, %v2716_v23  ;;  %v465_v39 = vsub.f32 %v3802_v58, %v2790_v36  ;;  %v374_v5 = vand.u32 2147483647, %v358_v50  ;;  %v469_v40 = vsub.f32 %v3803_v29, %v2790_v36  ;;  %3807 = vst [vmem:[#allocation6_spill] sm:$0xff] %v2850_v25  ;;  %v2865_v56 = vld [vmem:[%s3677_s0 + $0x38] sm:$0xff] }
 0x1a7   :  { %1603 = vperm.xlu0 %2009, %v2140_v9   ;;  %v359_v9 = vsub.f32 %v3795_v49, %v2716_v23  ;;  %v3804_v23 = vld [vmem:[#allocation17_spill] sm:$0xff]  ;;  %v384_v61 = vadd.f32 %v368_v51, %v2734_v19  ;;  %v377_v54 = vand.u32 2147483647, %v361_v52  ;;  %v376_v28 = vand.u32 2147483647, %v360_v20 }
 0x1a8   :  { %v371_v55 = vand.u32 2147483647, %v355_v0  ;;  %v466_v0 = vsub.f32 %v3804_v23, %v2790_v36  ;;  %v480_v15 = vand.u32 2147483647, %v464_v26  ;;  %v378_v49 = vand.u32 2147483647, %v362_v34 }
 0x1a9   :  { %v2802_v62 = vpop.permute.xlu1 %1018  ;;  %v375_v47 = vand.u32 2147483647, %v359_v9  ;;  %v471_v50 = vsub.f32 %v3806_v38, %v2790_v36  ;;  %v386_v19 = vadd.f32 %v370_v21, %v2755_v43  ;;  %v2854_v51 = vadd.f32 %v373_v2, %v272_v30  ;;  %v3810_v2 = vld [vmem:[#allocation20_spill] sm:$0xff] }
 0x1aa   :  { %1462 = vperm.xlu1 %2007, %v2104_v3   ;;  %v2817_v42 = vpop.permute.xlu0 %1135  ;;  %v3801_v3 = vld [vmem:[#allocation14_spill] sm:$0xff]  ;;  %v2843_v12 = vadd.f32 %v371_v55, %v270_v59  ;;  %v388_v52 = vadd.f32 %v372_v14, %v2762_v1  ;;  %v481_v59 = vand.u32 2147483647, %v465_v39  ;;  %v390_v13 = vadd.f32 %v374_v5, %v2767_v44  ;;  %v2899_v39 = vld [vmem:[%s3678_s1 + $0x4] ss:$0 sm:$0xff]  ;;  %v3816_v23 = vld [vmem:[#allocation24_spill] sm:$0xff] }
 0x1ab   :  { %v467_v4 = vsub.f32 %v3801_v3, %v2790_v36  ;;  %1611 = vperm.xlu0 %2009, %v2152_v11   ;;  %v2837_v11 = vld [vmem:[%s3677_s0 + $0x28] sm:$0xff]  ;;  %v2859_v20 = vadd.f32 %v375_v47, %v274_v37  ;;  %v485_v26 = vand.u32 2147483647, %v469_v40  ;;  %v482_v55 = vand.u32 2147483647, %v466_v0  ;;  %v3808_v37 = vld [vmem:[#allocation19_spill] sm:$0xff] }
 0x1ac   :  { %v2869_v43 = vadd.f32 %v377_v54, %v2773_v7  ;;  %v392_v1 = vadd.f32 %v376_v28, %v2771_v60  ;;  %v2872_v30 = vadd.f32 %v480_v15, %v379_v27  ;;  %v468_v34 = vsub.f32 %v3808_v37, %v2790_v36  ;;  %v2888_v60 = vld [vmem:[%s3677_s0 + $0x78] sm:$0xff]  ;;  %v3812_v27 = vld [vmem:[#allocation21_spill] sm:$0xff]  ;;  %v2915_v54 = vld [vmem:[%s3677_s0 + $0x48] sm:$0xff] }
 0x1ad   :  { %v2828_v46 = vpop.permute.xlu1 %1026  ;;  %v483_v9 = vand.u32 2147483647, %v467_v4  ;;  %v2879_v3 = vadd.f32 %v378_v49, %v2776_v32  ;;  %v487_v21 = vand.u32 2147483647, %v471_v50  ;;  %v473_v14 = vsub.f32 %v3810_v2, %v2790_v36  ;;  %3811 = vst [vmem:[#allocation8_spill] sm:$0xff] %v2888_v60  ;;  %v3813_v32 = vld [vmem:[#allocation22_spill] sm:$0xff] }
 0x1ae   :  { %1470 = vperm.xlu1 %2007, %v2837_v11   ;;  %v2841_v48 = vpop.permute.xlu0 %1143  ;;  %v497_v7 = vadd.f32 %v481_v59, %v2783_v8  ;;  %v470_v58 = vsub.f32 %v3812_v27, %v2790_v36  ;;  %v2903_v5 = vadd.f32 %v485_v26, %v384_v61  ;;  %v2906_v29 = vadd.f32 %v482_v55, %v2794_v10  ;;  %v3815_v8 = vld [vmem:[#allocation23_spill] sm:$0xff]  ;;  %v3817_v61 = vld [vmem:[#allocation25_spill] sm:$0xff]  ;;  %v3818_v10 = vld [vmem:[#allocation26_spill] sm:$0xff] }
 0x1af   :  { %3805 = vst [vmem:[#allocation5_spill] sm:$0xff] %v2841_v48  ;;  %1619 = vperm.xlu0 %2009, %v2850_v25   ;;  %v2881_v4 = vadd.f32 %v483_v9, %v382_v24  ;;  %v475_v24 = vsub.f32 %v3813_v32, %v2790_v36  ;;  %v472_v40 = vsub.f32 %v3815_v8, %v2790_v36  ;;  %v484_v28 = vand.u32 2147483647, %v468_v34  ;;  %v3819_v9 = vld [vmem:[#allocation27_spill] sm:$0xff]  ;;  %v3821_v55 = vld [vmem:[#allocation28_spill] sm:$0xff]  ;;  %v3822_v2 = vld [vmem:[#allocation29_spill] sm:$0xff] }
 0x1b0   :  { %v477_v0 = vsub.f32 %v3816_v23, %v2790_v36  ;;  %v474_v15 = vsub.f32 %v3817_v61, %v2790_v36  ;;  %v479_v49 = vsub.f32 %v3818_v10, %v2790_v36  ;;  %v476_v38 = vsub.f32 %v3819_v9, %v2790_v36  ;;  %v3823_v23 = vld [vmem:[#allocation30_spill] sm:$0xff]  ;;  %v3824_v10 = vld [vmem:[#allocation31_spill] sm:$0xff] }
 0x1b1   :  { %v2857_v53 = vpop.permute.xlu1 %1034  ;;  %v2926_v59 = vadd.f32 %v487_v21, %v386_v19  ;;  %v489_v26 = vand.u32 2147483647, %v473_v14  ;;  %v582_v37 = vsub.f32 %v3821_v55, %v2899_v39  ;;  %v478_v34 = vsub.f32 %v3822_v2, %v2790_v36  ;;  %v2940_v19 = vld [vmem:[%s3677_s0 + $0x8] sm:$0xff]  ;;  %v3826_v14 = vld [vmem:[#allocation32_spill] sm:$0xff] }
 0x1b2   :  { %1478 = vperm.xlu1 %2007, %v2865_v56   ;;  %v2876_v44 = vpop.permute.xlu0 %1151  ;;  %v3683_v27 = vmov 14   ;;  %v486_v32 = vand.u32 2147483647, %v470_v58  ;;  %v491_v8 = vand.u32 2147483647, %v475_v24  ;;  %v585_v61 = vsub.f32 %v3823_v23, %v2899_v39  ;;  %3825 = vst [vmem:[#allocation11_spill] sm:$0xff] %v2940_v19 }
 0x1b3   :  { %3809 = vst [vmem:[#allocation7_spill] sm:$0xff] %v2876_v44  ;;  %1627 = vperm.xlu0 %2009, %v2888_v60   ;;  %v581_v9 = vsub.f32 %v3824_v10, %v2899_v39  ;;  %v488_v21 = vand.u32 2147483647, %v472_v40  ;;  %v493_v36 = vand.u32 2147483647, %v477_v0  ;;  %v587_v55 = vsub.f32 %v3826_v14, %v2899_v39  ;;  %v3827_v58 = vld [vmem:[#allocation33_spill] sm:$0xff] }
 0x1b4   :  { %v583_v24 = vsub.f32 %v3827_v58, %v2899_v39  ;;  %v2950_v2 = vld [vmem:[%s3677_s0 + $0x58] sm:$0xff]  ;;  %v500_v10 = vadd.f32 %v484_v28, %v2804_v16  ;;  %v495_v40 = vand.u32 2147483647, %v479_v49  ;;  %v492_v0 = vand.u32 2147483647, %v476_v38  ;;  %v3829_v58 = vld [vmem:[#allocation34_spill] sm:$0xff] }
 0x1b5   :  { %v2901_v47 = vpop.permute.xlu1 %1042  ;;  %v2956_v35 = vadd.f32 %v489_v26, %v388_v52  ;;  %v598_v14 = vand.u32 2147483647, %v582_v37  ;;  %v494_v31 = vand.u32 2147483647, %v478_v34  ;;  %v589_v17 = vsub.f32 %v3829_v58, %v2899_v39  ;;  %v2968_v16 = vld [vmem:[%s3677_s0 + $0x20] sm:$0xff]  ;;  %v3833_v37 = vld [vmem:[#allocation35_spill] sm:$0xff] }
 0x1b6   :  { %3814 = vst [vmem:[#allocation9_spill] sm:$0xff] %v2901_v47  ;;  %1486 = vperm.xlu1 %2007, %v2915_v54   ;;  %v2924_v50 = vpop.permute.xlu0 %1159  ;;  %v502_v47 = vadd.f32 %v486_v32, %v2819_v22  ;;  %v2963_v44 = vadd.f32 %v491_v8, %v390_v13  ;;  %v601_v48 = vand.u32 2147483647, %v585_v61  ;;  %3831 = vst [vmem:[#allocation14_spill] sm:$0xff] %v2968_v16  ;;  %v599_v49 = vand.u32 2147483647, %v583_v24 }
 0x1b7   :  { %3820 = vst [vmem:[#allocation10_spill] sm:$0xff] %v2924_v50  ;;  %2012 = vset.pattern.permute.xlu0 %v3683_v27  ;;  %v490_v27 = vand.u32 2147483647, %v474_v15  ;;  %v504_v52 = vadd.f32 %v488_v21, %v2843_v12  ;;  %v2972_v28 = vadd.f32 %v493_v36, %v392_v1  ;;  %v603_v15 = vand.u32 2147483647, %v587_v55  ;;  %v3834_v8 = vld [vmem:[#allocation36_spill] sm:$0xff] }
 0x1b8   :  { %1688 = vperm.xlu0 %2012, %v2940_v19   ;;  %v2979_v38 = vadd.f32 %v495_v40, %v2879_v3  ;;  %v508_v26 = vadd.f32 %v492_v0, %v2859_v20  ;;  %v584_v34 = vsub.f32 %v3833_v37, %v2899_v39  ;;  %v2984_v32 = vadd.f32 %v598_v14, %v497_v7  ;;  %v3836_v7 = vld [vmem:[#allocation37_spill] sm:$0xff]  ;;  %v3840_v55 = vld [vmem:[#allocation40_spill] sm:$0xff] }
 0x1b9   :  { %v506_v13 = vadd.f32 %v490_v27, %v2854_v51  ;;  %v510_v12 = vadd.f32 %v494_v31, %v2869_v43  ;;  %v605_v1 = vand.u32 2147483647, %v589_v17  ;;  %v591_v61 = vsub.f32 %v3834_v8, %v2899_v39  ;;  %v2992_v51 = vld [vmem:[%s3678_s1 + $0x5] ss:$0 sm:$0xff]  ;;  %v3837_v31 = vld [vmem:[#allocation38_spill] sm:$0xff]  ;;  %v3006_v43 = vld [vmem:[%s3677_s0 + $0x30] sm:$0xff] }
 0x1ba   :  { %1494 = vperm.xlu1 %2007, %v2950_v2   ;;  %v2953_v23 = vpop.permute.xlu1 %1103  ;;  %v2996_v27 = vadd.f32 %v601_v48, %v500_v10  ;;  %v593_v17 = vsub.f32 %v3837_v31, %v2899_v39  ;;  %3838 = vst [vmem:[#allocation17_spill] sm:$0xff] %v3006_v43  ;;  %v3009_v21 = vadd.f32 %v603_v15, %v502_v47  ;;  %v600_v10 = vand.u32 2147483647, %v584_v34  ;;  %v3842_v40 = vld [vmem:[#allocation41_spill] sm:$0xff]  ;;  %v3843_v47 = vld [vmem:[#allocation42_spill] sm:$0xff]  ;;  %v3845_v37 = vld [vmem:[#allocation44_spill] sm:$0xff] }
 0x1bb   :  { %3828 = vst [vmem:[#allocation12_spill] sm:$0xff] %v2953_v23  ;;  %v2960_v50 = vpop.permute.xlu0 %1220  ;;  %v597_v23 = vand.u32 2147483647, %v581_v9  ;;  %v586_v9 = vsub.f32 %v3836_v7, %v2899_v39  ;;  %v3012_v48 = vadd.f32 %v599_v49, %v2906_v29  ;;  %v595_v24 = vsub.f32 %v3840_v55, %v2899_v39  ;;  %v3844_v29 = vld [vmem:[#allocation43_spill] sm:$0xff]  ;;  %v3846_v7 = vld [vmem:[#allocation45_spill] sm:$0xff] }
 0x1bc   :  { %3830 = vst [vmem:[#allocation13_spill] sm:$0xff] %v2960_v50  ;;  %1700 = vperm.xlu0 %2012, %v2968_v16   ;;  %v590_v0 = vsub.f32 %v3842_v40, %v2899_v39  ;;  %v698_v14 = vsub.f32 %v3843_v47, %v2992_v51  ;;  %v592_v58 = vsub.f32 %v3844_v29, %v2899_v39  ;;  %v607_v49 = vand.u32 2147483647, %v591_v61  ;;  %v3848_v40 = vld [vmem:[#allocation46_spill] sm:$0xff]  ;;  %v3849_v47 = vld [vmem:[#allocation47_spill] sm:$0xff]  ;;  %v3851_v29 = vld [vmem:[#allocation48_spill] sm:$0xff] }
 0x1bd   :  { %v613_v20 = vadd.f32 %v597_v23, %v2872_v30  ;;  %v3839_v30 = vld [vmem:[#allocation39_spill] sm:$0xff]  ;;  %v3027_v15 = vadd.f32 %v605_v1, %v504_v52  ;;  %v701_v8 = vsub.f32 %v3845_v37, %v2992_v51  ;;  %v594_v31 = vsub.f32 %v3846_v7, %v2899_v39  ;;  %v3042_v52 = vld [vmem:[%s3677_s0 + $0x40] sm:$0xff] }
 0x1be   :  { %1502 = vperm.xlu1 %2007, %v2850_v25   ;;  %v2975_v22 = vpop.permute.xlu1 %1107  ;;  %v588_v36 = vsub.f32 %v3839_v30, %v2899_v39  ;;  %v602_v34 = vand.u32 2147483647, %v586_v9  ;;  %v609_v55 = vand.u32 2147483647, %v593_v17  ;;  %3850 = vst [vmem:[#allocation20_spill] sm:$0xff] %v3042_v52  ;;  %v705_v37 = vsub.f32 %v3851_v29, %v2992_v51  ;;  %v3852_v9 = vld [vmem:[#allocation49_spill] sm:$0xff] }
 0x1bf   :  { %3832 = vst [vmem:[#allocation15_spill] sm:$0xff] %v2975_v22  ;;  %v2994_v3 = vpop.permute.xlu0 %1232  ;;  %v703_v22 = vsub.f32 %v3848_v40, %v2992_v51  ;;  %v611_v61 = vand.u32 2147483647, %v595_v24  ;;  %v699_v17 = vsub.f32 %v3852_v9, %v2992_v51  ;;  %v3853_v7 = vmov 13   ;;  %v3855_v29 = vld [vmem:[#allocation50_spill] sm:$0xff] }
 0x1c0   :  { %3835 = vst [vmem:[#allocation16_spill] sm:$0xff] %v2994_v3  ;;  %1708 = vperm.xlu0 %2012, %v3006_v43   ;;  %v596_v3 = vsub.f32 %v3849_v47, %v2899_v39  ;;  %v604_v1 = vand.u32 2147483647, %v588_v36  ;;  %v616_v39 = vadd.f32 %v600_v10, %v2881_v4  ;;  %v606_v47 = vand.u32 2147483647, %v590_v0  ;;  %v3066_v10 = vld [vmem:[%s3677_s0 + $0x50] sm:$0xff] }
 0x1c1   :  { %v3054_v50 = vadd.f32 %v607_v49, %v506_v13  ;;  %v717_v36 = vand.u32 2147483647, %v701_v8  ;;  %v610_v24 = vand.u32 2147483647, %v594_v31  ;;  %v618_v9 = vadd.f32 %v602_v34, %v2903_v5  ;;  %3857 = vst [vmem:[#allocation23_spill] sm:$0xff] %v3066_v10  ;;  %v3083_v31 = vld [vmem:[%s3677_s0 + $0x10] sm:$0xff] }
 0x1c2   :  { %1510 = vperm.xlu1 %2007, %v2888_v60   ;;  %v3019_v23 = vpop.permute.xlu1 %1115  ;;  %v707_v60 = vsub.f32 %v3855_v29, %v2992_v51  ;;  %v612_v4 = vand.u32 2147483647, %v596_v3  ;;  %v620_v13 = vadd.f32 %v604_v1, %v2926_v59  ;;  %v3070_v0 = vadd.f32 %v611_v61, %v510_v12  ;;  %v3858_v3 = vld [vmem:[#allocation51_spill] sm:$0xff]  ;;  %v3861_v1 = vld [vmem:[#allocation53_spill] sm:$0xff] }
 0x1c3   :  { %3841 = vst [vmem:[#allocation18_spill] sm:$0xff] %v3019_v23  ;;  %v3033_v30 = vpop.permute.xlu0 %1240  ;;  %v608_v23 = vand.u32 2147483647, %v592_v58  ;;  %v715_v58 = vand.u32 2147483647, %v699_v17  ;;  %v622_v5 = vadd.f32 %v606_v47, %v2956_v35  ;;  %v700_v8 = vsub.f32 %v3858_v3, %v2992_v51  ;;  %v3859_v35 = vld [vmem:[#allocation52_spill] sm:$0xff] }
 0x1c4   :  { %3847 = vst [vmem:[#allocation19_spill] sm:$0xff] %v3033_v30  ;;  %1716 = vperm.xlu0 %2012, %v3042_v52   ;;  %v714_v30 = vand.u32 2147483647, %v698_v14  ;;  %v721_v14 = vand.u32 2147483647, %v705_v37  ;;  %v3086_v59 = vadd.f32 %v717_v36, %v616_v39  ;;  %v626_v12 = vadd.f32 %v610_v24, %v2972_v28  ;;  %v3862_v28 = vld [vmem:[#allocation54_spill] sm:$0xff] }
 0x1c5   :  { %v723_v34 = vand.u32 2147483647, %v707_v60  ;;  %v702_v61 = vsub.f32 %v3861_v1, %v2992_v51  ;;  %v711_v60 = vsub.f32 %v3862_v28, %v2992_v51  ;;  %v3108_v37 = vld [vmem:[%s3677_s0 + $0x60] sm:$0xff]  ;;  %v3863_v39 = vld [vmem:[#allocation55_spill] sm:$0xff]  ;;  %v3864_v47 = vld [vmem:[#allocation56_spill] sm:$0xff] }
 0x1c6   :  { %2010 = vset.pattern.permute.xlu1 %v3853_v7  ;;  %v3050_v40 = vpop.permute.xlu1 %1123  ;;  %v3061_v7 = vadd.f32 %v609_v55, %v508_v26  ;;  %v3075_v26 = vadd.f32 %v714_v30, %v613_v20  ;;  %v709_v20 = vsub.f32 %v3859_v35, %v2992_v51  ;;  %v628_v55 = vadd.f32 %v612_v4, %v2979_v38  ;;  %v3867_v3 = vld [vmem:[#allocation58_spill] sm:$0xff]  ;;  %v3869_v1 = vld [vmem:[#allocation60_spill] sm:$0xff] }
 0x1c7   :  { %3854 = vst [vmem:[#allocation21_spill] sm:$0xff] %v3050_v40  ;;  %1571 = vperm.xlu1 %2010, %v2940_v19   ;;  %v3058_v25 = vpop.permute.xlu0 %1248  ;;  %v719_v40 = vand.u32 2147483647, %v703_v22  ;;  %v624_v22 = vadd.f32 %v608_v23, %v2963_v44  ;;  %v3094_v44 = vld [vmem:[%s3678_s1 + $0x6] ss:$0 sm:$0xff]  ;;  %v3111_v17 = vadd.f32 %v721_v14, %v620_v13  ;;  %v704_v38 = vsub.f32 %v3863_v39, %v2992_v51  ;;  %v3868_v13 = vld [vmem:[#allocation59_spill] sm:$0xff] }
 0x1c8   :  { %3856 = vst [vmem:[#allocation22_spill] sm:$0xff] %v3058_v25  ;;  %1724 = vperm.xlu0 %2012, %v3066_v10   ;;  %v713_v36 = vsub.f32 %v3864_v47, %v2992_v51  ;;  %v716_v29 = vand.u32 2147483647, %v700_v8  ;;  %v816_v35 = vsub.f32 %v3867_v3, %v3094_v44  ;;  %v708_v14 = vsub.f32 %v3868_v13, %v2992_v51  ;;  %v3870_v39 = vld [vmem:[#allocation61_spill] sm:$0xff]  ;;  %v3872_v3 = vld [vmem:[#allocation62_spill] sm:$0xff]  ;;  %v3873_v13 = vld [vmem:[#allocation63_spill] sm:$0xff] }
 0x1c9   :  { %v3098_v30 = vadd.f32 %v719_v40, %v618_v9  ;;  %v731_v40 = vadd.f32 %v715_v58, %v2984_v32  ;;  %v3866_v9 = vld [vmem:[#allocation57_spill] sm:$0xff]  ;;  %v3127_v32 = vadd.f32 %v723_v34, %v622_v5  ;;  %v725_v58 = vand.u32 2147483647, %v709_v20  ;;  %v3142_v5 = vld [vmem:[%s3677_s0 + $0x70] sm:$0xff] }
 0x1ca   :  { %v3072_v49 = vpop.permute.xlu1 %1131  ;;  %v706_v4 = vsub.f32 %v3866_v9, %v2992_v51  ;;  %v819_v28 = vsub.f32 %v3869_v1, %v3094_v44  ;;  %v710_v8 = vsub.f32 %v3870_v39, %v2992_v51  ;;  %v718_v9 = vand.u32 2147483647, %v702_v61  ;;  %v3874_v1 = vld [vmem:[#allocation64_spill] sm:$0xff] }
 0x1cb   :  { %1575 = vperm.xlu1 %2010, %v3083_v31   ;;  %v3096_v23 = vpop.permute.xlu0 %1256  ;;  %v727_v19 = vand.u32 2147483647, %v711_v60  ;;  %v720_v34 = vand.u32 2147483647, %v704_v38  ;;  %v729_v20 = vand.u32 2147483647, %v713_v36  ;;  %v823_v39 = vsub.f32 %v3874_v1, %v3094_v44 }
 0x1cc   :  { %3860 = vst [vmem:[#allocation24_spill] sm:$0xff] %v3096_v23  ;;  %1732 = vperm.xlu0 %2012, %v3108_v37   ;;  %v821_v23 = vsub.f32 %v3872_v3, %v3094_v44  ;;  %v3150_v60 = vadd.f32 %v716_v29, %v3012_v48  ;;  %v722_v3 = vand.u32 2147483647, %v706_v4  ;;  %v726_v25 = vand.u32 2147483647, %v710_v8 }
 0x1cd   :  { %v815_v38 = vsub.f32 %v2532_v18, %v3094_v44  ;;  %v734_v1 = vadd.f32 %v718_v9, %v2996_v27  ;;  %v3690_v4 = vmov 15  }
 0x1ce   :  { %v3118_v24 = vpop.permute.xlu1 %1139  ;;  %v837_v48 = vand.u32 2147483647, %v821_v23  ;;  %v738_v27 = vadd.f32 %v722_v3, %v3027_v15  ;;  %v3878_v23 = vld [vmem:[#allocation65_spill] sm:$0xff]  ;;  %v3191_v9 = vadd.f32 %v726_v25, %v3061_v7  ;;  %v3881_v3 = vld [vmem:[#allocation70_spill] sm:$0xff] }
 0x1cf   :  { %3865 = vst [vmem:[#allocation25_spill] sm:$0xff] %v3118_v24  ;;  %1583 = vperm.xlu1 %2010, %v2968_v16   ;;  %v3133_v47 = vpop.permute.xlu0 %1264  ;;  %v712_v24 = vsub.f32 %v3873_v13, %v2992_v51  ;;  %v832_v16 = vand.u32 2147483647, %v816_v35  ;;  %v724_v51 = vand.u32 2147483647, %v708_v14  ;;  %v3153_v13 = vadd.f32 %v725_v58, %v624_v22  ;;  %v3877_v58 = vld [vmem:[#allocation68_spill] sm:$0xff] }
 0x1d0   :  { %3871 = vst [vmem:[#allocation26_spill] sm:$0xff] %v3133_v47  ;;  %1740 = vperm.xlu0 %2012, %v3142_v5   ;;  %v835_v47 = vand.u32 2147483647, %v819_v28  ;;  %v736_v35 = vadd.f32 %v720_v34, %v3009_v21  ;;  %v3164_v22 = vadd.f32 %v729_v20, %v628_v55  ;;  %v839_v14 = vand.u32 2147483647, %v823_v39  ;;  %v3880_v20 = vld [vmem:[#allocation66_spill] sm:$0xff] }
 0x1d1   :  { %v728_v29 = vand.u32 2147483647, %v712_v24  ;;  %v818_v28 = vsub.f32 %v3877_v58, %v3094_v44  ;;  %v740_v21 = vadd.f32 %v724_v51, %v3054_v50  ;;  %v825_v55 = vsub.f32 %v3878_v23, %v3094_v44  ;;  %v3185_v24 = vld [vmem:[%s3678_s1 + $0x7] ss:$0 sm:$0xff]  ;;  %v3207_v25 = vld [vmem:[%s3678_s1 + $0x8] ss:$0 sm:$0xff] }
 0x1d2   :  { %v3147_v61 = vpop.permute.xlu1 %1147  ;;  %v3188_v8 = vadd.f32 %v835_v47, %v734_v1  ;;  %v831_v15 = vand.u32 2147483647, %v815_v38  ;;  %v3195_v50 = vadd.f32 %v837_v48, %v736_v35  ;;  %v817_v39 = vsub.f32 %v3880_v20, %v3094_v44  ;;  %v3883_v1 = vld [vmem:[#allocation72_spill] sm:$0xff]  ;;  %v3884_v58 = vld [vmem:[#allocation74_spill] sm:$0xff] }
 0x1d3   :  { %3875 = vst [vmem:[#allocation27_spill] sm:$0xff] %v3147_v61  ;;  %1591 = vperm.xlu1 %2010, %v3006_v43   ;;  %v3157_v36 = vpop.permute.xlu0 %1272  ;;  %v3160_v61 = vadd.f32 %v727_v19, %v626_v12  ;;  %v3173_v19 = vld [vmem:[%s3677_s0] sm:$0xff]  ;;  %v3177_v12 = vadd.f32 %v832_v16, %v731_v40  ;;  %v3198_v34 = vadd.f32 %v728_v29, %v3070_v0  ;;  %v834_v38 = vand.u32 2147483647, %v818_v28  ;;  %v3220_v29 = vld [vmem:[%s3677_s0 + $0x18] sm:$0xff] }
 0x1d4   :  { %3876 = vst [vmem:[#allocation28_spill] sm:$0xff] %v3157_v36  ;;  %2013 = vset.pattern.permute.xlu0 %v3690_v4  ;;  %v3879_v16 = vld [vmem:[#allocation73_spill] sm:$0xff]  ;;  %v820_v51 = vsub.f32 %v3881_v3, %v3094_v44  ;;  %v3211_v47 = vadd.f32 %v839_v14, %v738_v27  ;;  %v822_v0 = vsub.f32 %v3883_v1, %v3094_v44  ;;  %v841_v35 = vand.u32 2147483647, %v825_v55  ;;  %v3885_v14 = vld [vmem:[#allocation75_spill] sm:$0xff]  ;;  %v3886_v27 = vld [vmem:[#allocation76_spill] sm:$0xff] }
 0x1d5   :  { %1801 = vperm.xlu0 %2013, %v3173_v19   ;;  %v935_v40 = vsub.f32 %v3879_v16, %v3185_v24  ;;  %v1052_v48 = vsub.f32 %v2719_v45, %v3207_v25  ;;  %v824_v23 = vsub.f32 %v3884_v58, %v3094_v44  ;;  %v937_v28 = vsub.f32 %v3885_v14, %v3185_v24  ;;  %v3889_v3 = vld [vmem:[#allocation67_spill] sm:$0xff]  ;;  %v3890_v4 = vld [vmem:[#allocation77_spill] sm:$0xff] }
 0x1d6   :  { %v3168_v18 = vpop.permute.xlu1 %1155  ;;  %v826_v16 = vsub.f32 %v3886_v27, %v3094_v44  ;;  %v3233_v20 = vadd.f32 %v831_v15, %v3075_v26  ;;  %v827_v1 = vsub.f32 %v3889_v3, %v3094_v44  ;;  %v939_v58 = vsub.f32 %v3890_v4, %v3185_v24 }
 0x1d7   :  { %1599 = vperm.xlu1 %2010, %v3042_v52   ;;  %v951_v55 = vand.u32 2147483647, %v935_v40  ;;  %v3239_v52 = vand.u32 2147483647, %v817_v39  ;;  %v836_v14 = vand.u32 2147483647, %v820_v51  ;;  %v1054_v26 = vsub.f32 %v2744_v41, %v3207_v25 }
 0x1d8   :  { %v3209_v7 = vpop.permute.xlu0 %1333  ;;  %3888 = vst [vmem:[#allocation31_spill] sm:$0xff] %v3233_v20  ;;  %v850_v40 = vadd.f32 %v834_v38, %v3086_v59  ;;  %v838_v3 = vand.u32 2147483647, %v822_v0  ;;  %v1068_v43 = vand.u32 2147483647, %v1052_v48  ;;  %v3254_v39 = vadd.f32 %v841_v35, %v740_v21 }
 0x1d9   :  { %3882 = vst [vmem:[#allocation29_spill] sm:$0xff] %v3209_v7  ;;  %1813 = vperm.xlu0 %2013, %v3220_v29   ;;  %v3891_v7 = vld [vmem:[#allocation78_spill] sm:$0xff]  ;;  %v840_v51 = vand.u32 2147483647, %v824_v23  ;;  %v3259_v41 = vand.u32 2147483647, %v827_v1  ;;  %v1056_v38 = vsub.f32 %v2764_v63, %v3207_v25 }
 0x1da   :  { %v828_v27 = vsub.f32 %v3891_v7, %v3094_v44  ;;  %v953_v7 = vand.u32 2147483647, %v937_v28  ;;  %v967_v36 = vadd.f32 %v951_v55, %v850_v40  ;;  %v955_v59 = vand.u32 2147483647, %v939_v58  ;;  %v3269_v35 = vld [vmem:[%s3678_s1 + $0xb] ss:$0 sm:$0xff] }
 0x1db   :  { %1607 = vperm.xlu1 %2010, %v3066_v10   ;;  %v3230_v45 = vpop.permute.xlu1 %1216  ;;  %v3246_v10 = vld [vmem:[%s3678_s1 + $0x9] ss:$0 sm:$0xff]  ;;  %v1070_v48 = vand.u32 2147483647, %v1054_v26  ;;  %v854_v28 = vadd.f32 %v838_v3, %v3111_v17  ;;  %v856_v63 = vadd.f32 %v840_v51, %v3127_v32  ;;  %v1058_v40 = vsub.f32 %v2802_v62, %v3207_v25 }
 0x1dc   :  { %3887 = vst [vmem:[#allocation30_spill] sm:$0xff] %v3230_v45  ;;  %v1346_v15 = vpop.permute.xlu0 %1345  ;;  %v1169_v4 = vsub.f32 %v2731_v6, %v3246_v10  ;;  %v842_v45 = vand.u32 2147483647, %v826_v16  ;;  %v852_v6 = vadd.f32 %v836_v14, %v3098_v30  ;;  %v844_v0 = vand.u32 2147483647, %v828_v27 }
 0x1dd   :  { %1821 = vperm.xlu0 %2013, %v2837_v11   ;;  %v1171_v21 = vsub.f32 %v2752_v57, %v3246_v10  ;;  %v1084_v16 = vadd.f32 %v1068_v43, %v967_v36  ;;  %v1403_v55 = vsub.f32 %v1346_v15, %v3269_v35  ;;  %v3892_v57 = vld [vmem:[#allocation79_spill] sm:$0xff]  ;;  %v3281_v27 = vld [vmem:[%s3678_s1 + $0xa] ss:$0 sm:$0xff]  ;;  %v971_v17 = vadd.f32 %v955_v59, %v854_v28  ;;  %v3894_v28 = vld [vmem:[#allocation81_spill] sm:$0xff] }
 0x1de   :  { %v1185_v1 = vand.u32 2147483647, %v1169_v4  ;;  %v969_v30 = vadd.f32 %v953_v7, %v852_v6  ;;  %v858_v58 = vadd.f32 %v842_v45, %v3153_v13  ;;  %v941_v14 = vsub.f32 %v3892_v57, %v3185_v24 }
 0x1df   :  { %1615 = vperm.xlu1 %2010, %v3108_v37   ;;  %v3257_v20 = vpop.permute.xlu1 %1224  ;;  %v1072_v36 = vand.u32 2147483647, %v1056_v38  ;;  %v1173_v26 = vsub.f32 %v2780_v33, %v3246_v10  ;;  %v860_v13 = vadd.f32 %v844_v0, %v3160_v61  ;;  %v1187_v15 = vand.u32 2147483647, %v1171_v21  ;;  %v3893_v33 = vld [vmem:[#allocation80_spill] sm:$0xff]  ;;  %v3895_v0 = vld [vmem:[#allocation83_spill] sm:$0xff] }
 0x1e0   :  { %v1354_v23 = vpop.permute.xlu0 %1353  ;;  %v1086_v45 = vadd.f32 %v1070_v48, %v969_v30  ;;  %v1201_v4 = vadd.f32 %v1185_v1, %v1084_v16  ;;  %v1419_v7 = vand.u32 2147483647, %v1403_v55  ;;  %v957_v59 = vand.u32 2147483647, %v941_v14 }
 0x1e1   :  { %1829 = vperm.xlu0 %2013, %v2865_v56   ;;  %v1405_v6 = vsub.f32 %v1354_v23, %v3269_v35  ;;  %v830_v38 = vsub.f32 %v3893_v33, %v3094_v44  ;;  %v943_v61 = vsub.f32 %v3894_v28, %v3185_v24  ;;  %v945_v48 = vsub.f32 %v3895_v0, %v3185_v24 }
 0x1e2   :  { %v3896_v21 = vmov 14   ;;  %v1088_v16 = vadd.f32 %v1072_v36, %v971_v17  ;;  %v1189_v1 = vand.u32 2147483647, %v1173_v26  ;;  %v1203_v30 = vadd.f32 %v1187_v15, %v1086_v45 }
 0x1e3   :  { %1623 = vperm.xlu1 %2010, %v3142_v5   ;;  %v1229_v43 = vpop.permute.xlu1 %1228  ;;  %v1074_v57 = vand.u32 2147483647, %v1058_v40  ;;  %v1175_v14 = vsub.f32 %v2817_v42, %v3246_v10  ;;  %v1421_v0 = vand.u32 2147483647, %v1405_v6  ;;  %v973_v36 = vadd.f32 %v957_v59, %v856_v63 }
 0x1e4   :  { %v1286_v32 = vsub.f32 %v1229_v43, %v3281_v27  ;;  %v1362_v3 = vpop.permute.xlu0 %1361  ;;  %v1060_v43 = vsub.f32 %v2828_v46, %v3207_v25  ;;  %v846_v26 = vand.u32 2147483647, %v830_v38  ;;  %v961_v45 = vand.u32 2147483647, %v945_v48 }
 0x1e5   :  { %1837 = vperm.xlu0 %2013, %v2915_v54   ;;  %v1407_v17 = vsub.f32 %v1362_v3, %v3269_v35  ;;  %v1205_v40 = vadd.f32 %v1189_v1, %v1088_v16  ;;  %v1062_v42 = vsub.f32 %v2857_v53, %v3207_v25  ;;  %v3897_v3 = vld [vmem:[#allocation5_spill] sm:$0xff]  ;;  %v3899_v16 = vld [vmem:[#allocation82_spill] sm:$0xff] }
 0x1e6   :  { %v1302_v51 = vand.u32 2147483647, %v1286_v32  ;;  %v1076_v6 = vand.u32 2147483647, %v1060_v43  ;;  %v933_v1 = vsub.f32 %v3899_v16, %v3185_v24  ;;  %v3901_v43 = vld [vmem:[#allocation7_spill] sm:$0xff] }
 0x1e7   :  { %2011 = vset.pattern.permute.xlu1 %v3896_v21  ;;  %v1237_v62 = vpop.permute.xlu1 %1236  ;;  %v1177_v21 = vsub.f32 %v3897_v3, %v3246_v10  ;;  %v3903_v3 = vld [vmem:[#allocation8_spill] sm:$0xff] }
 0x1e8   :  { %v1318_v55 = vadd.f32 %v1302_v51, %v1201_v4  ;;  %v1288_v23 = vsub.f32 %v1237_v62, %v3281_v27  ;;  %1684 = vperm.xlu1 %2011, %v3173_v19   ;;  %v1370_v32 = vpop.permute.xlu0 %1369  ;;  %v959_v19 = vand.u32 2147483647, %v943_v61  ;;  %v1090_v51 = vadd.f32 %v1074_v57, %v973_v36  ;;  %v3898_v62 = vld [vmem:[#allocation6_spill] sm:$0xff] }
 0x1e9   :  { %1845 = vperm.xlu0 %2013, %v2950_v2   ;;  %v1423_v61 = vand.u32 2147483647, %v1407_v17  ;;  %v1409_v48 = vsub.f32 %v1370_v32, %v3269_v35 }
 0x1ea   :  { %v3305_v33 = vadd.f32 %v1419_v7, %v1318_v55  ;;  %v1304_v28 = vand.u32 2147483647, %v1288_v23  ;;  %v1191_v7 = vand.u32 2147483647, %v1175_v14  ;;  %v975_v53 = vadd.f32 %v959_v19, %v858_v58  ;;  %v3900_v23 = vld [vmem:[#allocation85_spill] sm:$0xff] }
 0x1eb   :  { %v1245_v15 = vpop.permute.xlu1 %1244  ;;  %v977_v55 = vadd.f32 %v961_v45, %v860_v13  ;;  %v1078_v14 = vand.u32 2147483647, %v1062_v42  ;;  %v1193_v58 = vand.u32 2147483647, %v1177_v21  ;;  %v3902_v19 = vld [vmem:[#allocation9_spill] sm:$0xff] }
 0x1ec   :  { %v1320_v4 = vadd.f32 %v1304_v28, %v1203_v30  ;;  %v1290_v46 = vsub.f32 %v1245_v15, %v3281_v27  ;;  %1692 = vperm.xlu1 %2011, %v3083_v31   ;;  %v1378_v63 = vpop.permute.xlu0 %1377  ;;  %v947_v30 = vsub.f32 %v3900_v23, %v3185_v24  ;;  %v1179_v28 = vsub.f32 %v3901_v43, %v3246_v10 }
 0x1ed   :  { %1853 = vperm.xlu0 %2013, %v3898_v62   ;;  %v1207_v32 = vadd.f32 %v1191_v7, %v1090_v51  ;;  %v1092_v36 = vadd.f32 %v1076_v6, %v975_v53  ;;  %v1064_v15 = vsub.f32 %v3902_v19, %v3207_v25  ;;  %v1411_v42 = vsub.f32 %v1378_v63, %v3269_v35  ;;  %v3905_v63 = vld [vmem:[#allocation10_spill] sm:$0xff] }
 0x1ee   :  { %v3315_v59 = vadd.f32 %v1421_v0, %v1320_v4  ;;  %v1306_v38 = vand.u32 2147483647, %v1290_v46  ;;  %v1425_v46 = vand.u32 2147483647, %v1409_v48  ;;  %v963_v16 = vand.u32 2147483647, %v947_v30 }
 0x1ef   :  { %v1253_v57 = vpop.permute.xlu1 %1252  ;;  %v1094_v6 = vadd.f32 %v1078_v14, %v977_v55  ;;  %v1195_v21 = vand.u32 2147483647, %v1179_v28  ;;  %v1209_v48 = vadd.f32 %v1193_v58, %v1092_v36  ;;  %v1080_v23 = vand.u32 2147483647, %v1064_v15  ;;  %v3907_v14 = vld [vmem:[#allocation69_spill] sm:$0xff]  ;;  %v3908_v58 = vld [vmem:[#allocation86_spill] sm:$0xff] }
 0x1f0   :  { %v1322_v0 = vadd.f32 %v1306_v38, %v1205_v40  ;;  %v1292_v17 = vsub.f32 %v1253_v57, %v3281_v27  ;;  %1696 = vperm.xlu1 %2011, %v3220_v29   ;;  %v1386_v13 = vpop.permute.xlu0 %1385  ;;  %v862_v40 = vadd.f32 %v846_v26, %v3164_v22  ;;  %v949_v38 = vand.u32 2147483647, %v933_v1  ;;  %v3904_v29 = vld [vmem:[#allocation87_spill] sm:$0xff]  ;;  %v3906_v22 = vld [vmem:[#allocation12_spill] sm:$0xff] }
 0x1f1   :  { %1861 = vperm.xlu0 %2013, %v3903_v3   ;;  %v1050_v51 = vsub.f32 %v3904_v29, %v3207_v25  ;;  %v1181_v57 = vsub.f32 %v3905_v63, %v3246_v10  ;;  %v1167_v26 = vsub.f32 %v3906_v22, %v3246_v10  ;;  %v1413_v55 = vsub.f32 %v1386_v13, %v3269_v35 }
 0x1f2   :  { %v3329_v45 = vadd.f32 %v1423_v61, %v1322_v0  ;;  %v1308_v4 = vand.u32 2147483647, %v1292_v17  ;;  %v1427_v0 = vand.u32 2147483647, %v1411_v42  ;;  %v829_v28 = vsub.f32 %v3907_v14, %v3094_v44 }
 0x1f3   :  { %v1261_v7 = vpop.permute.xlu1 %1260  ;;  %v979_v17 = vadd.f32 %v963_v16, %v862_v40  ;;  %v936_v19 = vsub.f32 %v3908_v58, %v3185_v24  ;;  %v1211_v15 = vadd.f32 %v1195_v21, %v1094_v6  ;;  %v1197_v29 = vand.u32 2147483647, %v1181_v57 }
 0x1f4   :  { %v1324_v53 = vadd.f32 %v1308_v4, %v1207_v32  ;;  %v1294_v61 = vsub.f32 %v1261_v7, %v3281_v27  ;;  %1704 = vperm.xlu1 %2011, %v2837_v11   ;;  %v1394_v1 = vpop.permute.xlu0 %1393  ;;  %v965_v11 = vadd.f32 %v949_v38, %v3177_v12  ;;  %v1066_v32 = vand.u32 2147483647, %v1050_v51  ;;  %v3909_v7 = vld [vmem:[#allocation13_spill] sm:$0xff] }
 0x1f5   :  { %v1096_v42 = vadd.f32 %v1080_v23, %v979_v17  ;;  %v1183_v13 = vand.u32 2147483647, %v1167_v26  ;;  %v1284_v44 = vsub.f32 %v3909_v7, %v3281_v27  ;;  %v1429_v40 = vand.u32 2147483647, %v1413_v55  ;;  %v3910_v23 = vld [vmem:[#allocation88_spill] sm:$0xff]  ;;  %v3913_v17 = vld [vmem:[#allocation71_spill] sm:$0xff] }
 0x1f6   :  { %v3342_v30 = vadd.f32 %v1425_v46, %v1324_v53  ;;  %v1310_v43 = vand.u32 2147483647, %v1294_v61  ;;  %v1415_v38 = vsub.f32 %v1394_v1, %v3269_v35  ;;  %v3359_v51 = vadd.f32 %v3239_v52, %v3150_v60  ;;  %v3372_v52 = vld [vmem:[%s3678_s1 + $0xc] ss:$0 sm:$0xff]  ;;  %v3911_v60 = vld [vmem:[#allocation89_spill] sm:$0xff]  ;;  %v3916_v7 = vld [vmem:[#allocation92_spill] sm:$0xff] }
 0x1f7   :  { %v1269_v36 = vpop.permute.xlu1 %1268  ;;  %v845_v6 = vand.u32 2147483647, %v829_v28  ;;  %v1082_v21 = vadd.f32 %v1066_v32, %v965_v11  ;;  %v938_v63 = vsub.f32 %v3910_v23, %v3185_v24  ;;  %v1213_v1 = vadd.f32 %v1197_v29, %v1096_v42 }
 0x1f8   :  { %v1326_v4 = vadd.f32 %v1310_v43, %v1209_v48  ;;  %v1296_v46 = vsub.f32 %v1269_v36, %v3281_v27  ;;  %1712 = vperm.xlu1 %2011, %v2865_v56   ;;  %v3363_v56 = vadd.f32 %v3259_v41, %v3191_v9  ;;  %v952_v48 = vand.u32 2147483647, %v936_v19  ;;  %v3912_v41 = vld [vmem:[#allocation90_spill] sm:$0xff] }
 0x1f9   :  { %v1455_v16 = vpop.permute.xlu0 %1454  ;;  %v1053_v9 = vsub.f32 %v3911_v60, %v3207_v25  ;;  %v940_v26 = vsub.f32 %v3912_v41, %v3185_v24  ;;  %v1199_v43 = vadd.f32 %v1183_v13, %v1082_v21  ;;  %v1431_v28 = vand.u32 2147483647, %v1415_v38  ;;  %v3914_v36 = vld [vmem:[#allocation18_spill] sm:$0xff] }
 0x1fa   :  { %v3354_v53 = vadd.f32 %v1427_v0, %v1326_v4  ;;  %v1312_v12 = vand.u32 2147483647, %v1296_v46  ;;  %v1300_v0 = vand.u32 2147483647, %v1284_v44  ;;  %v932_v32 = vsub.f32 %v3913_v17, %v3185_v24  ;;  %v3915_v46 = vld [vmem:[#allocation91_spill] sm:$0xff] }
 0x1fb   :  { %v1277_v61 = vpop.permute.xlu1 %1276  ;;  %v1170_v58 = vsub.f32 %v3914_v36, %v3246_v10  ;;  %v1518_v19 = vsub.f32 %v1455_v16, %v3372_v52  ;;  %v954_v4 = vand.u32 2147483647, %v938_v63  ;;  %v1055_v42 = vsub.f32 %v3915_v46, %v3207_v25 }
 0x1fc   :  { %v1328_v57 = vadd.f32 %v1312_v12, %v1211_v15  ;;  %v1298_v22 = vsub.f32 %v1277_v61, %v3281_v27  ;;  %1720 = vperm.xlu1 %2011, %v2915_v54   ;;  %v3381_v54 = vadd.f32 %v845_v6, %v3198_v34  ;;  %v968_v15 = vadd.f32 %v952_v48, %v3188_v8  ;;  %v3917_v12 = vld [vmem:[#allocation93_spill] sm:$0xff] }
 0x1fd   :  { %v1467_v11 = vpop.permute.xlu0 %1466  ;;  %v1069_v34 = vand.u32 2147483647, %v1053_v9  ;;  %v942_v44 = vsub.f32 %v3916_v7, %v3185_v24  ;;  %v956_v16 = vand.u32 2147483647, %v940_v26  ;;  %v1316_v6 = vadd.f32 %v1300_v0, %v1199_v43  ;;  %v3918_v8 = vld [vmem:[#allocation21_spill] sm:$0xff]  ;;  %v3920_v26 = vld [vmem:[#allocation94_spill] sm:$0xff] }
 0x1fe   :  { %v3378_v55 = vadd.f32 %v1429_v40, %v1328_v57  ;;  %v1314_v14 = vand.u32 2147483647, %v1298_v22  ;;  %v1057_v40 = vsub.f32 %v3917_v12, %v3207_v25  ;;  %v1172_v21 = vsub.f32 %v3918_v8, %v3246_v10 }
 0x1ff   :  { %v1186_v23 = vand.u32 2147483647, %v1170_v58  ;;  %v1534_v22 = vand.u32 2147483647, %v1518_v19  ;;  %v3403_v60 = vand.u32 2147483647, %v932_v32  ;;  %v970_v9 = vadd.f32 %v954_v4, %v3195_v50 }
 0x200   :  { %v1330_v29 = vadd.f32 %v1314_v14, %v1213_v1  ;;  %1728 = vperm.xlu1 %2011, %v2950_v2   ;;  %v1338_v13 = vpop.permute.xlu1 %1337  ;;  %v3919_v2 = vld [vmem:[#allocation16_spill] sm:$0xff]  ;;  %v1071_v41 = vand.u32 2147483647, %v1055_v42  ;;  %v944_v1 = vsub.f32 %v3920_v26, %v3185_v24  ;;  %v1085_v0 = vadd.f32 %v1069_v34, %v968_v15  ;;  %v3921_v32 = vld [vmem:[#allocation19_spill] sm:$0xff] }
 0x201   :  { %v1401_v38 = vsub.f32 %v1338_v13, %v3269_v35  ;;  %v1475_v48 = vpop.permute.xlu0 %1474  ;;  %v1287_v63 = vsub.f32 %v3919_v2, %v3281_v27  ;;  %v958_v14 = vand.u32 2147483647, %v942_v44  ;;  %v972_v36 = vadd.f32 %v956_v16, %v3211_v47  ;;  %v3922_v15 = vld [vmem:[#allocation84_spill] sm:$0xff]  ;;  %v3923_v47 = vld [vmem:[#allocation95_spill] sm:$0xff] }
 0x202   :  { %v3399_v61 = vadd.f32 %v1431_v28, %v1330_v29  ;;  %v1073_v28 = vand.u32 2147483647, %v1057_v40  ;;  %v1188_v58 = vand.u32 2147483647, %v1172_v21  ;;  %v1289_v19 = vsub.f32 %v3921_v32, %v3281_v27  ;;  %v3926_v26 = vld [vmem:[#allocation96_spill] sm:$0xff] }
 0x203   :  { %v1417_v57 = vand.u32 2147483647, %v1401_v38  ;;  %v1174_v50 = vsub.f32 %v3072_v49, %v3246_v10  ;;  %v1202_v46 = vadd.f32 %v1186_v23, %v1085_v0  ;;  %v1303_v42 = vand.u32 2147483647, %v1287_v63  ;;  %v3924_v38 = vld [vmem:[#allocation22_spill] sm:$0xff]  ;;  %v3925_v23 = vld [vmem:[#allocation25_spill] sm:$0xff] }
 0x204   :  { %1736 = vperm.xlu1 %2011, %v3898_v62   ;;  %v3409_v43 = vpop.permute.xlu1 %1341  ;;  %v1521_v62 = vsub.f32 %v1467_v11, %v3372_v52  ;;  %v934_v13 = vsub.f32 %v3922_v15, %v3185_v24  ;;  %v1087_v34 = vadd.f32 %v1071_v41, %v970_v9  ;;  %v960_v7 = vand.u32 2147483647, %v944_v1  ;;  %v3927_v0 = vld [vmem:[#allocation97_spill] sm:$0xff] }
 0x205   :  { %v1433_v17 = vadd.f32 %v1417_v57, %v1316_v6  ;;  %v1483_v4 = vpop.permute.xlu0 %1482  ;;  %v1059_v44 = vsub.f32 %v3923_v47, %v3207_v25  ;;  %v974_v49 = vadd.f32 %v958_v14, %v3254_v39  ;;  %v1089_v40 = vadd.f32 %v1073_v28, %v972_v36 }
 0x206   :  { %v1291_v16 = vsub.f32 %v3924_v38, %v3281_v27  ;;  %v1204_v11 = vadd.f32 %v1188_v58, %v1087_v34  ;;  %v1305_v8 = vand.u32 2147483647, %v1289_v19  ;;  %v1190_v21 = vand.u32 2147483647, %v1174_v50  ;;  %v3929_v58 = vld [vmem:[#allocation24_spill] sm:$0xff] }
 0x207   :  { %v3416_v29 = vadd.f32 %v1534_v22, %v1433_v17  ;;  %v1176_v2 = vsub.f32 %v3925_v23, %v3246_v10  ;;  %v1319_v57 = vadd.f32 %v1303_v42, %v1202_v46  ;;  %v1537_v9 = vand.u32 2147483647, %v1521_v62  ;;  %v3931_v62 = vld [vmem:[#allocation27_spill] sm:$0xff] }
 0x208   :  { %1744 = vperm.xlu1 %2011, %v3903_v3   ;;  %v1350_v12 = vpop.permute.xlu1 %1349  ;;  %v1523_v3 = vsub.f32 %v1475_v48, %v3372_v52  ;;  %v976_v39 = vadd.f32 %v960_v7, %v3363_v56  ;;  %v1075_v41 = vand.u32 2147483647, %v1059_v44  ;;  %v946_v1 = vsub.f32 %v3926_v26, %v3185_v24  ;;  %v3930_v48 = vld [vmem:[#allocation11_spill] sm:$0xff] }
 0x209   :  { %v1404_v6 = vsub.f32 %v1350_v12, %v3269_v35  ;;  %v1491_v63 = vpop.permute.xlu0 %1490  ;;  %v1061_v14 = vsub.f32 %v3927_v0, %v3207_v25  ;;  %v3928_v28 = vmov 15   ;;  %v1307_v36 = vand.u32 2147483647, %v1291_v16 }
 0x20a   :  { %v1293_v32 = vsub.f32 %v3929_v58, %v3281_v27  ;;  %v1321_v56 = vadd.f32 %v1305_v8, %v1204_v11  ;;  %v1206_v46 = vadd.f32 %v1190_v21, %v1089_v40  ;;  %v1192_v42 = vand.u32 2147483647, %v1176_v2  ;;  %v3933_v40 = vld [vmem:[#allocation26_spill] sm:$0xff] }
 0x20b   :  { %v1420_v22 = vand.u32 2147483647, %v1404_v6  ;;  %v1178_v34 = vsub.f32 %v3931_v62, %v3246_v10  ;;  %v1539_v12 = vand.u32 2147483647, %v1523_v3  ;;  %v1525_v38 = vsub.f32 %v1483_v4, %v3372_v52 }
 0x20c   :  { %2014 = vset.pattern.permute.xlu1 %v3928_v28  ;;  %v1358_v17 = vpop.permute.xlu1 %1357  ;;  %v1091_v16 = vadd.f32 %v1075_v41, %v974_v49  ;;  %v962_v6 = vand.u32 2147483647, %v946_v1  ;;  %v1077_v23 = vand.u32 2147483647, %v1061_v14  ;;  %v1309_v11 = vand.u32 2147483647, %v1293_v32 }
 0x20d   :  { %v1436_v19 = vadd.f32 %v1420_v22, %v1319_v57  ;;  %v1406_v50 = vsub.f32 %v1358_v17, %v3269_v35  ;;  %1805 = vperm.xlu1 %2014, %v3930_v48   ;;  %v1499_v7 = vpop.permute.xlu0 %1498  ;;  %v3932_v57 = vld [vmem:[#allocation99_spill] sm:$0xff]  ;;  %v1295_v8 = vsub.f32 %v3933_v40, %v3281_v27  ;;  %v1194_v0 = vand.u32 2147483647, %v1178_v34  ;;  %v3934_v32 = vld [vmem:[#allocation98_spill] sm:$0xff] }
 0x20e   :  { %v1063_v22 = vsub.f32 %v3932_v57, %v3207_v25  ;;  %v1208_v3 = vadd.f32 %v1192_v42, %v1091_v16  ;;  %v1180_v4 = vsub.f32 %v3168_v18, %v3246_v10  ;;  %v1541_v14 = vand.u32 2147483647, %v1525_v38  ;;  %v3936_v42 = vld [vmem:[#allocation14_spill] sm:$0xff] }
 0x20f   :  { %v3443_v47 = vadd.f32 %v1537_v9, %v1436_v19  ;;  %v1422_v44 = vand.u32 2147483647, %v1406_v50  ;;  %v1323_v9 = vadd.f32 %v1307_v36, %v1206_v46  ;;  %v1527_v28 = vsub.f32 %v1491_v63, %v3372_v52  ;;  %v3935_v50 = vld [vmem:[#allocation101_spill] sm:$0xff] }
 0x210   :  { %v1366_v26 = vpop.permute.xlu1 %1365  ;;  %v978_v17 = vadd.f32 %v962_v6, %v3381_v54  ;;  %v1093_v58 = vadd.f32 %v1077_v23, %v976_v39  ;;  %v1049_v19 = vsub.f32 %v3934_v32, %v3207_v25  ;;  %v1166_v48 = vsub.f32 %v3935_v50, %v3246_v10  ;;  %v3937_v54 = vld [vmem:[#allocation28_spill] sm:$0xff]  ;;  %v3938_v23 = vld [vmem:[#allocation31_spill] sm:$0xff] }
 0x211   :  { %v1438_v21 = vadd.f32 %v1422_v44, %v1321_v56  ;;  %v1408_v2 = vsub.f32 %v1366_v26, %v3269_v35  ;;  %1809 = vperm.xlu1 %2014, %v3083_v31   ;;  %v1507_v49 = vpop.permute.xlu0 %1506  ;;  %v1079_v31 = vand.u32 2147483647, %v1063_v22  ;;  %v1311_v56 = vand.u32 2147483647, %v1295_v8 }
 0x212   :  { %v1325_v62 = vadd.f32 %v1309_v11, %v1208_v3  ;;  %v1210_v34 = vadd.f32 %v1194_v0, %v1093_v58  ;;  %v1196_v63 = vand.u32 2147483647, %v1180_v4  ;;  %v1297_v39 = vsub.f32 %v3937_v54, %v3281_v27  ;;  %v3939_v11 = vld [vmem:[#allocation30_spill] sm:$0xff]  ;;  %v3941_v0 = vld [vmem:[#allocation17_spill] sm:$0xff] }
 0x213   :  { %v3454_v41 = vadd.f32 %v1539_v12, %v1438_v21  ;;  %v1424_v1 = vand.u32 2147483647, %v1408_v2  ;;  %v1543_v38 = vand.u32 2147483647, %v1527_v28  ;;  %v1529_v16 = vsub.f32 %v1499_v7, %v3372_v52  ;;  %v3940_v2 = vld [vmem:[#allocation100_spill] sm:$0xff] }
 0x214   :  { %v1374_v36 = vpop.permute.xlu1 %1373  ;;  %v964_v57 = vadd.f32 %v3403_v60, %v3938_v23  ;;  %v1065_v22 = vand.u32 2147483647, %v1049_v19  ;;  %v1095_v26 = vadd.f32 %v1079_v31, %v978_v17  ;;  %v1283_v40 = vsub.f32 %v3939_v11, %v3281_v27  ;;  %v3943_v31 = vld [vmem:[#allocation29_spill] sm:$0xff] }
 0x215   :  { %v1440_v18 = vadd.f32 %v1424_v1, %v1323_v9  ;;  %v1410_v46 = vsub.f32 %v1374_v36, %v3269_v35  ;;  %1817 = vperm.xlu1 %2014, %v3936_v42   ;;  %v950_v21 = vand.u32 2147483647, %v934_v13  ;;  %v1051_v9 = vsub.f32 %v3940_v2, %v3207_v25  ;;  %v3942_v25 = vld [vmem:[#allocation15_spill] sm:$0xff] }
 0x216   :  { %v3469_v6 = vpop.permute.xlu0 %1567  ;;  %v1182_v4 = vand.u32 2147483647, %v1166_v48  ;;  %v1327_v60 = vadd.f32 %v1311_v56, %v1210_v34  ;;  %v1212_v1 = vadd.f32 %v1196_v63, %v1095_v26  ;;  %v1545_v58 = vand.u32 2147483647, %v1529_v16 }
 0x217   :  { %v3466_v44 = vadd.f32 %v1541_v14, %v1440_v18  ;;  %v1426_v12 = vand.u32 2147483647, %v1410_v46  ;;  %v1313_v14 = vand.u32 2147483647, %v1297_v39  ;;  %v1531_v32 = vsub.f32 %v1507_v49, %v3372_v52  ;;  %v3944_v18 = vld [vmem:[#allocation20_spill] sm:$0xff] }
 0x218   :  { %v1382_v8 = vpop.permute.xlu1 %1381  ;;  %v1081_v15 = vadd.f32 %v1065_v22, %v964_v57  ;;  %v1168_v13 = vsub.f32 %v3942_v25, %v3246_v10  ;;  %v1299_v19 = vand.u32 2147483647, %v1283_v40  ;;  %v1400_v36 = vsub.f32 %v3943_v31, %v3269_v35 }
 0x219   :  { %v1442_v3 = vadd.f32 %v1426_v12, %v1325_v62  ;;  %v1412_v7 = vsub.f32 %v1382_v8, %v3269_v35  ;;  %1825 = vperm.xlu1 %2014, %v3941_v0   ;;  %v966_v46 = vadd.f32 %v950_v21, %v3359_v51  ;;  %v1067_v42 = vand.u32 2147483647, %v1051_v9  ;;  %v3945_v51 = vld [vmem:[#allocation23_spill] sm:$0xff] }
 0x21a   :  { %v3485_v24 = vpop.permute.xlu0 %1579  ;;  %v1198_v49 = vadd.f32 %v1182_v4, %v1081_v15  ;;  %v1285_v62 = vsub.f32 %v3257_v20, %v3281_v27  ;;  %v1329_v34 = vadd.f32 %v1313_v14, %v1212_v1  ;;  %v1547_v54 = vand.u32 2147483647, %v1531_v32 }
 0x21b   :  { %v3482_v28 = vadd.f32 %v1543_v38, %v1442_v3  ;;  %v1428_v17 = vand.u32 2147483647, %v1412_v7  ;;  %v1184_v12 = vand.u32 2147483647, %v1168_v13  ;;  %v1416_v16 = vand.u32 2147483647, %v1400_v36 }
 0x21c   :  { %v1390_v50 = vpop.permute.xlu1 %1389  ;;  %v1315_v38 = vadd.f32 %v1299_v19, %v1198_v49  ;;  %v1402_v23 = vsub.f32 %v3409_v43, %v3269_v35  ;;  %v1083_v26 = vadd.f32 %v1067_v42, %v966_v46  ;;  %v1301_v11 = vand.u32 2147483647, %v1285_v62 }
 0x21d   :  { %v1444_v48 = vadd.f32 %v1428_v17, %v1327_v60  ;;  %v1414_v56 = vsub.f32 %v1390_v50, %v3269_v35  ;;  %1833 = vperm.xlu1 %2014, %v3944_v18  }
 0x21e   :  { %v3498_v39 = vpop.permute.xlu0 %1587  ;;  %v1200_v8 = vadd.f32 %v1184_v12, %v1083_v26  ;;  %v1432_v21 = vadd.f32 %v1416_v16, %v1315_v38  ;;  %v1418_v2 = vand.u32 2147483647, %v1402_v23  ;;  %v3551_v26 = vld [vmem:[%s3678_s1 + $0xd] ss:$0 sm:$0xff] }
 0x21f   :  { %v3496_v63 = vadd.f32 %v1545_v58, %v1444_v48  ;;  %v1430_v10 = vand.u32 2147483647, %v1414_v56 }
 0x220   :  { %v1317_v35 = vadd.f32 %v1301_v11, %v1200_v8 }
 0x221   :  { %v1446_v57 = vadd.f32 %v1430_v10, %v1329_v34  ;;  %1841 = vperm.xlu1 %2014, %v3945_v51   ;;  %v1451_v22 = vpop.permute.xlu1 %1450 }
 0x222   :  { %v1517_v20 = vsub.f32 %v1451_v22, %v3372_v52  ;;  %v3506_v40 = vpop.permute.xlu0 %1595  ;;  %v1434_v4 = vadd.f32 %v1418_v2, %v1317_v35 }
 0x223   :  { %v3504_v27 = vadd.f32 %v1547_v54, %v1446_v57 }
 0x224   :  { %v1533_v9 = vand.u32 2147483647, %v1517_v20 }
 0x225   :  { %1849 = vperm.xlu1 %2014, %v3108_v37   ;;  %v1459_v3 = vpop.permute.xlu1 %1458 }
 0x226   :  { %v3509_v43 = vadd.f32 %v1533_v9, %v1432_v21  ;;  %v1519_v7 = vsub.f32 %v1459_v3, %v3372_v52  ;;  %v3512_v0 = vpop.permute.xlu0 %1603  ;;  %v3564_v9 = vld [vmem:[%s3678_s1 + $0xe] ss:$0 sm:$0xff] }
 0x228   :  { %v1535_v60 = vand.u32 2147483647, %v1519_v7 }
 0x229   :  { %1857 = vperm.xlu1 %2014, %v3142_v5   ;;  %v1463_v1 = vpop.permute.xlu1 %1462 }
 0x22a   :  { %v1551_v14 = vadd.f32 %v1535_v60, %v1434_v4  ;;  %v1520_v17 = vsub.f32 %v1463_v1, %v3372_v52  ;;  %v3516_v58 = vpop.permute.xlu0 %1611 }
 0x22c   :  { %v1536_v32 = vand.u32 2147483647, %v1520_v17 }
 0x22d   :  { %v1471_v37 = vpop.permute.xlu1 %1470 }
 0x22e   :  { %v3519_v15 = vadd.f32 %v1536_v32, %v3305_v33  ;;  %v1522_v25 = vsub.f32 %v1471_v37, %v3372_v52  ;;  %v3522_v13 = vpop.permute.xlu0 %1619 }
 0x230   :  { %v1538_v19 = vand.u32 2147483647, %v1522_v25 }
 0x231   :  { %v1479_v31 = vpop.permute.xlu1 %1478 }
 0x232   :  { %v3525_v36 = vadd.f32 %v1538_v19, %v3315_v59  ;;  %v1524_v5 = vsub.f32 %v1479_v31, %v3372_v52  ;;  %v3528_v50 = vpop.permute.xlu0 %1627 }
 0x234   :  { %v1540_v48 = vand.u32 2147483647, %v1524_v5 }
 0x235   :  { %v1487_v56 = vpop.permute.xlu1 %1486 }
 0x236   :  { %v3531_v18 = vadd.f32 %v1540_v48, %v3329_v45  ;;  %v1526_v33 = vsub.f32 %v1487_v56, %v3372_v52 }
 0x237   :  { %v3534_v42 = vpop.permute.xlu0 %1688 }
 0x238   :  { %v1542_v46 = vand.u32 2147483647, %v1526_v33 }
 0x239   :  { %v1495_v49 = vpop.permute.xlu1 %1494 }
 0x23a   :  { %v3537_v62 = vadd.f32 %v1542_v46, %v3342_v30  ;;  %v1528_v59 = vsub.f32 %v1495_v49, %v3372_v52 }
 0x23b   :  { %v1701_v10 = vpop.permute.xlu0 %1700 }
 0x23c   :  { %v1544_v34 = vand.u32 2147483647, %v1528_v59 }
 0x23d   :  { %v1503_v54 = vpop.permute.xlu1 %1502 }
 0x23e   :  { %v3541_v12 = vadd.f32 %v1544_v34, %v3354_v53  ;;  %v1530_v45 = vsub.f32 %v1503_v54, %v3372_v52 }
 0x23f   :  { %v1709_v16 = vpop.permute.xlu0 %1708 }
 0x240   :  { %v1546_v38 = vand.u32 2147483647, %v1530_v45 }
 0x241   :  { %v1511_v23 = vpop.permute.xlu1 %1510 }
 0x242   :  { %v3545_v57 = vadd.f32 %v1546_v38, %v3378_v55  ;;  %v1532_v51 = vsub.f32 %v1511_v23, %v3372_v52 }
 0x243   :  { %v1717_v22 = vpop.permute.xlu0 %1716 }
 0x244   :  { %v1548_v30 = vand.u32 2147483647, %v1532_v51  ;;  %v1759_v48 = vsub.f32 %v1717_v22, %v3564_v9 }
 0x246   :  { %v3554_v53 = vadd.f32 %v1548_v30, %v3399_v61  ;;  %v1572_v11 = vpop.permute.xlu1 %1571  ;;  %v1755_v61 = vsub.f32 %v1701_v10, %v3564_v9  ;;  %v1775_v34 = vand.u32 2147483647, %v1759_v48 }
 0x247   :  { %v1635_v20 = vsub.f32 %v1572_v11, %v3551_v26  ;;  %v1725_v21 = vpop.permute.xlu0 %1724 }
 0x248   :  { %v1771_v17 = vand.u32 2147483647, %v1755_v61 }
 0x249   :  { %v1651_v8 = vand.u32 2147483647, %v1635_v20 }
 0x24a   :  { %v1576_v2 = vpop.permute.xlu1 %1575 }
 0x24b   :  { %v3558_v55 = vadd.f32 %v1651_v8, %v3416_v29  ;;  %v1636_v52 = vsub.f32 %v1576_v2, %v3551_v26  ;;  %v1733_v60 = vpop.permute.xlu0 %1732  ;;  %v1757_v29 = vsub.f32 %v1709_v16, %v3564_v9 }
 0x24d   :  { %v1652_v3 = vand.u32 2147483647, %v1636_v52  ;;  %v1773_v5 = vand.u32 2147483647, %v1757_v29  ;;  %v1634_v52 = vsub.f32 %v3469_v6, %v3551_v26 }
 0x24e   :  { %v1584_v35 = vpop.permute.xlu1 %1583 }
 0x24f   :  { %v3567_v7 = vadd.f32 %v1652_v3, %v1551_v14  ;;  %v1638_v4 = vsub.f32 %v1584_v35, %v3551_v26  ;;  %v1741_v14 = vpop.permute.xlu0 %1740  ;;  %v1650_v29 = vand.u32 2147483647, %v1634_v52 }
 0x251   :  { %v1654_v1 = vand.u32 2147483647, %v1638_v4 }
 0x252   :  { %v1592_v32 = vpop.permute.xlu1 %1591 }
 0x253   :  { %v1670_v37 = vadd.f32 %v1654_v1, %v3443_v47  ;;  %v1640_v25 = vsub.f32 %v1592_v32, %v3551_v26  ;;  %v1761_v47 = vsub.f32 %v1725_v21, %v3564_v9 }
 0x254   :  { %v1802_v38 = vpop.permute.xlu0 %1801 }
 0x255   :  { %v3573_v19 = vadd.f32 %v1771_v17, %v1670_v37  ;;  %v1656_v31 = vand.u32 2147483647, %v1640_v25  ;;  %v1777_v51 = vand.u32 2147483647, %v1761_v47 }
 0x256   :  { %v1600_v56 = vpop.permute.xlu1 %1599 }
 0x257   :  { %v1672_v33 = vadd.f32 %v1656_v31, %v3454_v41  ;;  %v1642_v46 = vsub.f32 %v1600_v56, %v3551_v26  ;;  %v1763_v41 = vsub.f32 %v1733_v60, %v3564_v9  ;;  %v1666_v31 = vadd.f32 %v1650_v29, %v3509_v43 }
 0x258   :  { %v1814_v20 = vpop.permute.xlu0 %1813 }
 0x259   :  { %v3578_v49 = vadd.f32 %v1773_v5, %v1672_v33  ;;  %v1658_v59 = vand.u32 2147483647, %v1642_v46  ;;  %v1779_v2 = vand.u32 2147483647, %v1763_v41  ;;  %v1637_v5 = vsub.f32 %v3485_v24, %v3551_v26 }
 0x25a   :  { %v1608_v10 = vpop.permute.xlu1 %1607  ;;  %v1641_v24 = vsub.f32 %v3506_v40, %v3551_v26 }
 0x25b   :  { %v1674_v54 = vadd.f32 %v1658_v59, %v3466_v44  ;;  %v1644_v45 = vsub.f32 %v1608_v10, %v3551_v26  ;;  %v1765_v44 = vsub.f32 %v1741_v14, %v3564_v9  ;;  %v1639_v59 = vsub.f32 %v3498_v39, %v3551_v26 }
 0x25c   :  { %v1822_v17 = vpop.permute.xlu0 %1821 }
 0x25d   :  { %v3583_v16 = vadd.f32 %v1775_v34, %v1674_v54  ;;  %v1660_v23 = vand.u32 2147483647, %v1644_v45  ;;  %v1781_v1 = vand.u32 2147483647, %v1765_v44  ;;  %v1655_v54 = vand.u32 2147483647, %v1639_v59 }
 0x25e   :  { %v1616_v30 = vpop.permute.xlu1 %1615 }
 0x25f   :  { %v1676_v22 = vadd.f32 %v1660_v23, %v3482_v28  ;;  %v1646_v11 = vsub.f32 %v1616_v30, %v3551_v26  ;;  %v3598_v28 = vld [vmem:[%s3678_s1 + $0xf] ss:$0 sm:$0xff]  ;;  %s2071_s1 = smov [#allocation2]  }
 0x260   :  { %v1868_v32 = vsub.f32 %v1802_v38, %v3598_v28  ;;  %v1830_v33 = vpop.permute.xlu0 %1829  ;;  %v1871_v47 = vsub.f32 %v1814_v20, %v3598_v28  ;;  %v1873_v41 = vsub.f32 %v1822_v17, %v3598_v28  ;;  %v1657_v20 = vand.u32 2147483647, %v1641_v24  ;;  %s1937_s20 = sshll.u32 %s2071_s1, 4  ;;  %s1938_s20 = int_to_ptr.vmem [resolvable:$true] %s1937_s20 }
 0x261   :  { %v3588_v8 = vadd.f32 %v1777_v51, %v1676_v22  ;;  %v1662_v21 = vand.u32 2147483647, %v1646_v11  ;;  %v1671_v11 = vadd.f32 %v1655_v54, %v3525_v36  ;;  %v1875_v52 = vsub.f32 %v1830_v33, %v3598_v28  ;;  %s2031_s21 = scalar_lea.vmem %s1938_s20, 2048  ;;  %p2036_p1 = scmp.lt.s32.totalorder %s1938_s20, %s1938_s20 }
 0x262   :  { %v1624_v3 = vpop.permute.xlu1 %1623  ;;  %v1884_v14 = vand.u32 2147483647, %v1868_v32  ;;  %v1887_v51 = vand.u32 2147483647, %v1871_v47  ;;  %v1889_v40 = vand.u32 2147483647, %v1873_v41  ;;  %v1645_v36 = vsub.f32 %v3516_v58, %v3551_v26  ;;  %p2032_p0 = scmp.ne.s32.totalorder %s1938_s20, %s2031_s21  ;;  %p2037_p2 = scmp.lt.s32.totalorder %s2031_s21, %s2031_s21 }
 0x263   :  { %v1678_v61 = vadd.f32 %v1662_v21, %v3496_v63  ;;  %v1648_v35 = vsub.f32 %v1624_v3, %v3551_v26  ;;  %v1643_v21 = vsub.f32 %v3512_v0, %v3551_v26  ;;  %v1891_v0 = vand.u32 2147483647, %v1875_v52 }
 0x264   :  { %v1838_v45 = vpop.permute.xlu0 %1837  ;;  %p2038_p3 = por %p2037_p2, %p2036_p1 }
 0x265   :  { %v3600_v4 = vadd.f32 %v1779_v2, %v1678_v61  ;;  %v1664_v60 = vand.u32 2147483647, %v1648_v35  ;;  %v1877_v32 = vsub.f32 %v1838_v45, %v3598_v28 }
 0x266   :  { %p2039_p4 = pnand %p2038_p3, %p2032_p0 }
 0x267   :  { %v1680_v6 = vadd.f32 %v1664_v60, %v3504_v27  ;;  %v1685_v37 = vpop.permute.xlu1 %1684  ;;  %v1653_v27 = vand.u32 2147483647, %v1637_v5  ;;  %v1673_v60 = vadd.f32 %v1657_v20, %v3531_v18  ;;  %v1661_v5 = vand.u32 2147483647, %v1645_v36 }
 0x268   :  { %v1751_v63 = vsub.f32 %v1685_v37, %v3564_v9  ;;  %v1846_v3 = vpop.permute.xlu0 %1845  ;;  %v1647_v18 = vsub.f32 %v3522_v13, %v3551_v26  ;;  %v1893_v58 = vand.u32 2147483647, %v1877_v32 }
 0x269   :  { %v3605_v25 = vadd.f32 %v1781_v1, %v1680_v6  ;;  %v1669_v38 = vadd.f32 %v1653_v27, %v3519_v15  ;;  %v1659_v1 = vand.u32 2147483647, %v1643_v21  ;;  %v1677_v47 = vadd.f32 %v1661_v5, %v3541_v12 }
 0x26a   :  { %v1767_v48 = vand.u32 2147483647, %v1751_v63 }
 0x26b   :  { %v3610_v56 = vpop.permute.xlu1 %1692 }
 0x26c   :  { %v1783_v46 = vadd.f32 %v1767_v48, %v1666_v31  ;;  %v1675_v31 = vadd.f32 %v1659_v1, %v3537_v62  ;;  %v1854_v48 = vpop.permute.xlu0 %1853  ;;  %v1649_v62 = vsub.f32 %v3528_v50, %v3551_v26  ;;  %v1752_v50 = vsub.f32 %v3534_v42, %v3564_v9 }
 0x26d   :  { %v1881_v24 = vsub.f32 %v1854_v48, %v3598_v28 }
 0x26e   :  { %v1900_v34 = vadd.f32 %v1884_v14, %v1783_v46  ;;  %v1879_v46 = vsub.f32 %v1846_v3, %v3598_v28 }
 0x26f   :  { %v1697_v10 = vpop.permute.xlu1 %1696 }
 0x270   :  { %1916 = vst [vmem:[#allocation2] sm:$0xff] %v1900_v34  ;;  %v1754_v43 = vsub.f32 %v1697_v10, %v3564_v9  ;;  %v1663_v10 = vand.u32 2147483647, %v1647_v18  ;;  %v1895_v13 = vand.u32 2147483647, %v1879_v46 }
 0x272   :  { %v1770_v23 = vand.u32 2147483647, %v1754_v43  ;;  %v1679_v41 = vadd.f32 %v1663_v10, %v3545_v57  ;;  %v1768_v57 = vand.u32 2147483647, %v1752_v50 }
 0x273   :  { %v1705_v39 = vpop.permute.xlu1 %1704 }
 0x274   :  { %v1786_v30 = vadd.f32 %v1770_v23, %v1669_v38  ;;  %v1756_v22 = vsub.f32 %v1705_v39, %v3564_v9  ;;  %v1862_v38 = vpop.permute.xlu0 %1861  ;;  %v1665_v39 = vand.u32 2147483647, %v1649_v62 }
 0x276   :  { %v1903_v2 = vadd.f32 %v1887_v51, %v1786_v30  ;;  %v1772_v44 = vand.u32 2147483647, %v1756_v22  ;;  %v1897_v22 = vand.u32 2147483647, %v1881_v24 }
 0x277   :  { %v1713_v15 = vpop.permute.xlu1 %1712 }
 0x278   :  { %1919 = vst [vmem:[#allocation2 + $0x18] sm:$0xff] %v1903_v2  ;;  %v1788_v61 = vadd.f32 %v1772_v44, %v1671_v11  ;;  %v1758_v35 = vsub.f32 %v1713_v15, %v3564_v9  ;;  %v1883_v11 = vsub.f32 %v1862_v38, %v3598_v28  ;;  %v1681_v2 = vadd.f32 %v1665_v39, %v3554_v53 }
 0x279   :  { %v1753_v15 = vsub.f32 %v3610_v56, %v3564_v9 }
 0x27a   :  { %v1905_v17 = vadd.f32 %v1889_v40, %v1788_v61  ;;  %v1774_v29 = vand.u32 2147483647, %v1758_v35  ;;  %v1899_v52 = vand.u32 2147483647, %v1883_v11 }
 0x27b   :  { %v1721_v6 = vpop.permute.xlu1 %1720  ;;  %v1769_v1 = vand.u32 2147483647, %v1753_v15 }
 0x27c   :  { %1921 = vst [vmem:[#allocation2 + $0x28] sm:$0xff] %v1905_v17  ;;  %v1790_v37 = vadd.f32 %v1774_v29, %v1673_v60  ;;  %v1760_v63 = vsub.f32 %v1721_v6, %v3564_v9  ;;  %v1784_v60 = vadd.f32 %v1768_v57, %v3558_v55 }
 0x27e   :  { %v1907_v14 = vadd.f32 %v1891_v0, %v1790_v37  ;;  %v1776_v33 = vand.u32 2147483647, %v1760_v63  ;;  %v1785_v0 = vadd.f32 %v1769_v1, %v3567_v7 }
 0x27f   :  { %v1729_v59 = vpop.permute.xlu1 %1728 }
 0x280   :  { %1923 = vst [vmem:[#allocation2 + $0x38] sm:$0xff] %v1907_v14  ;;  %v1792_v27 = vadd.f32 %v1776_v33, %v1675_v31  ;;  %v1762_v34 = vsub.f32 %v1729_v59, %v3564_v9 }
 0x282   :  { %v1909_v43 = vadd.f32 %v1893_v58, %v1792_v27  ;;  %v1778_v54 = vand.u32 2147483647, %v1762_v34 }
 0x283   :  { %v1737_v45 = vpop.permute.xlu1 %1736 }
 0x284   :  { %1925 = vst [vmem:[#allocation2 + $0x48] sm:$0xff] %v1909_v43  ;;  %v1794_v23 = vadd.f32 %v1778_v54, %v1677_v47  ;;  %v1764_v51 = vsub.f32 %v1737_v45, %v3564_v9 }
 0x286   :  { %v1911_v30 = vadd.f32 %v1895_v13, %v1794_v23  ;;  %v1780_v12 = vand.u32 2147483647, %v1764_v51 }
 0x287   :  { %v1745_v26 = vpop.permute.xlu1 %1744 }
 0x288   :  { %1927 = vst [vmem:[#allocation2 + $0x58] sm:$0xff] %v1911_v30  ;;  %v1796_v20 = vadd.f32 %v1780_v12, %v1679_v41  ;;  %v1766_v21 = vsub.f32 %v1745_v26, %v3564_v9 }
 0x28a   :  { %v1913_v44 = vadd.f32 %v1897_v22, %v1796_v20  ;;  %v1782_v40 = vand.u32 2147483647, %v1766_v21 }
 0x28c   :  { %1929 = vst [vmem:[#allocation2 + $0x68] sm:$0xff] %v1913_v44  ;;  %v1798_v3 = vadd.f32 %v1782_v40, %v1681_v2  ;;  %v1806_v61 = vpop.permute.xlu1 %1805 }
 0x28d   :  { %v1869_v35 = vsub.f32 %v1806_v61, %v3598_v28 }
 0x28e   :  { %v1915_v42 = vadd.f32 %v1899_v52, %v1798_v3 }
 0x28f   :  { %v1885_v36 = vand.u32 2147483647, %v1869_v35 }
 0x290   :  { %1931 = vst [vmem:[#allocation2 + $0x78] sm:$0xff] %v1915_v42  ;;  %v1810_v17 = vpop.permute.xlu1 %1809 }
 0x291   :  { %v1901_v53 = vadd.f32 %v1885_v36, %v1784_v60  ;;  %v1870_v29 = vsub.f32 %v1810_v17, %v3598_v28 }
 0x293   :  { %1917 = vst [vmem:[#allocation2 + $0x8] sm:$0xff] %v1901_v53  ;;  %v1886_v32 = vand.u32 2147483647, %v1870_v29 }
 0x294   :  { %v1818_v9 = vpop.permute.xlu1 %1817 }
 0x295   :  { %v1902_v56 = vadd.f32 %v1886_v32, %v1785_v0  ;;  %v1872_v6 = vsub.f32 %v1818_v9, %v3598_v28 }
 0x297   :  { %1918 = vst [vmem:[#allocation2 + $0x10] sm:$0xff] %v1902_v56  ;;  %v1888_v37 = vand.u32 2147483647, %v1872_v6 }
 0x298   :  { %v1826_v63 = vpop.permute.xlu1 %1825 }
 0x299   :  { %v1904_v55 = vadd.f32 %v1888_v37, %v3573_v19  ;;  %v1874_v31 = vsub.f32 %v1826_v63, %v3598_v28 }
 0x29b   :  { %1920 = vst [vmem:[#allocation2 + $0x20] sm:$0xff] %v1904_v55  ;;  %v1890_v5 = vand.u32 2147483647, %v1874_v31 }
 0x29c   :  { %v1834_v18 = vpop.permute.xlu1 %1833 }
 0x29d   :  { %v1906_v48 = vadd.f32 %v1890_v5, %v3578_v49  ;;  %v1876_v7 = vsub.f32 %v1834_v18, %v3598_v28 }
 0x29f   :  { %1922 = vst [vmem:[#allocation2 + $0x30] sm:$0xff] %v1906_v48  ;;  %v1892_v14 = vand.u32 2147483647, %v1876_v7 }
 0x2a0   :  { %v1842_v33 = vpop.permute.xlu1 %1841 }
 0x2a1   :  { %v1908_v58 = vadd.f32 %v1892_v14, %v3583_v16  ;;  %v1878_v46 = vsub.f32 %v1842_v33, %v3598_v28 }
 0x2a3   :  { %1924 = vst [vmem:[#allocation2 + $0x40] sm:$0xff] %v1908_v58  ;;  %v1894_v59 = vand.u32 2147483647, %v1878_v46 }
 0x2a4   :  { %v1850_v27 = vpop.permute.xlu1 %1849 }
 0x2a5   :  { %v1910_v19 = vadd.f32 %v1894_v59, %v3588_v8  ;;  %v1880_v34 = vsub.f32 %v1850_v27, %v3598_v28 }
 0x2a7   :  { %1926 = vst [vmem:[#allocation2 + $0x50] sm:$0xff] %v1910_v19  ;;  %v1896_v47 = vand.u32 2147483647, %v1880_v34 }
 0x2a8   :  { %v1858_v10 = vpop.permute.xlu1 %1857 }
 0x2a9   :  { %v1912_v49 = vadd.f32 %v1896_v47, %v3600_v4  ;;  %v1882_v62 = vsub.f32 %v1858_v10, %v3598_v28 }
 0x2ab   :  { %1928 = vst [vmem:[#allocation2 + $0x60] sm:$0xff] %v1912_v49  ;;  %v1898_v16 = vand.u32 2147483647, %v1882_v62 }
 0x2ad   :  { %v1914_v43 = vadd.f32 %v1898_v16, %v3605_v25 }
 0x2af   :  { %1930 = vst [vmem:[#allocation2 + $0x70] sm:$0xff] %v1914_v43 }
 0x2b0   :  { %2042 = shalt.err (!%p2039_p4)
}
 0x2b1   :  { %s2043_s24 = scalar_lea.hbm %s3679_s2, 2048 }
 0x2b2   :  { %p2044_p5 = scmp.ne.s32.totalorder %s3679_s2, %s2043_s24  ;;  %p2047_p6 = scmp.lt.u32.totalorder %s2043_s24, %s3679_s2 }
 0x2b4   :  { %p2049_p7 = pnand %p2047_p6, %p2044_p5 }
 0x2b6   :  { %2052 = shalt.err (!%p2049_p7)
}
 0x2b7   :  { %s2072_s29 = smov 128   ;;  %s2073_s30 = smov 8  }
 0x2b8   :  { %1943 = dma.vmem_to_hbm [thread:$0]  %s1938_s20, 2048, %s3679_s2, [#allocation3], %s2072_s29, %s2072_s29, %s2073_s30  }
 0x2b9   :  { %2053 = dma.done.wait [#allocation3], 2048  }
 0x2ba   :  { %2054 = vsyncadd [#allocation3], 4294965248 }
 0x2bb   :  { %1947 = vsyncpa [#allocation3], 1 }

</bundles_post_ra>
